<compile_context>
chip_gen: v5e
topology: v5e:2x2
jax: 0.10.0
libtpu: 0.0.40
codegen_flags: <defaults>
</compile_context>

<pallas_src>
import functools
import math

import jax
import jax.numpy as jnp
from jax.experimental import pallas as pl
from jax.experimental.pallas import tpu as pltpu


# -----------------------------------------------------------------------------
# helpers
# -----------------------------------------------------------------------------
def _layernorm(x, g, b, eps):
    mean = jnp.mean(x, axis=-1, keepdims=True)
    var = jnp.mean((x - mean) ** 2, axis=-1, keepdims=True)
    return (x - mean) * jax.lax.rsqrt(var + eps) * g + b


def _vmem_limit_bytes(bt, s, d, dff, maxd):
    """Derive a VMEM budget from the actual block sizes (bf16 weights)."""
    bf16, f32 = 2, 4
    w_layer = (d * 3 * d + d * d + d * dff + dff * d) * bf16 + 8 * maxd * f32
    act_blk = bt * s * d * f32
    interm = bt * s * (3 * d + dff) * f32          # qkv + FFN hidden
    need = 2 * (w_layer + 2 * act_blk) + act_blk + interm   # double-buffered streams
    need = int(need * 1.5) + (4 << 20)                      # headroom
    # stay comfortably under v7x's 64 MiB physical VMEM (v5e/v6e have 128 MiB)
    return max(16 << 20, min(need, 48 << 20))


# -----------------------------------------------------------------------------
# fused encoder kernel: one grid step = (one batch block, one layer)
# -----------------------------------------------------------------------------
def _encoder_kernel(x_ref, in_w_ref, out_w_ref, ff1_w_ref, ff2_w_ref, vec_ref,
                    o_ref, act_ref, *, nhead, bt, eps):
    layer = pl.program_id(1)

    m, d = act_ref.shape                 # m = bt * S
    s_len = m // bt
    dh = d // nhead
    dff = ff1_w_ref.shape[-1]
    scale = 1.0 / math.sqrt(dh)

    # Load the input activations once (layer 0); afterwards the running
    # activation lives in VMEM scratch for the whole layer stack of this block.
    @pl.when(layer == 0)
    def _():
        act_ref[...] = x_ref[...].reshape(m, d).astype(jnp.float32)

    x = act_ref[...]                     # (m, d) f32 carry
    x_bf = x.astype(jnp.bfloat16)

    # packed per-layer vectors: rows = [in_b, out_b, ff1_b, ff2_b,
    #                                   ln1_g, ln1_b, ln2_g, ln2_b]
    vec = vec_ref[0]                     # (8, maxd) f32
    in_b = vec[0:1, :3 * d]
    out_b = vec[1:2, :d]
    ff1_b = vec[2:3, :dff]
    ff2_b = vec[3:4, :d]
    ln1_g, ln1_b = vec[4:5, :d], vec[5:6, :d]
    ln2_g, ln2_b = vec[6:7, :d], vec[7:8, :d]

    # ---- fused QKV projection: bf16 operands, f32 accumulation --------------
    qkv = jnp.dot(x_bf, in_w_ref[0],
                  preferred_element_type=jnp.float32) + in_b      # (m, 3d)

    out_w = out_w_ref[0]                 # (d, d) bf16

    # ---- multi-head self-attention ------------------------------------------
    # Output projection is folded into the head loop (MXU accumulation) so no
    # lane-dim concatenate of dh-wide slabs is needed.  Per-batch-element row
    # slices are sublane-aligned (multiples of S).
    attn_rows = []
    for b in range(bt):                  # static, small
        r0 = b * s_len
        acc_b = jnp.zeros((s_len, d), jnp.float32)
        for h in range(nhead):           # static, small
            c = h * dh
            qh = qkv[r0:r0 + s_len, c:c + dh]
            kh = qkv[r0:r0 + s_len, d + c:d + c + dh]
            vh = qkv[r0:r0 + s_len, 2 * d + c:2 * d + c + dh]
            # contract last dims directly (no explicit K transpose)
            sc = jax.lax.dot_general(qh, kh, (((1,), (1,)), ((), ())),
                                     preferred_element_type=jnp.float32) * scale
            mx = jnp.max(sc, axis=-1, keepdims=True)
            p = jnp.exp(sc - mx)
            p = p * pl.reciprocal(jnp.sum(p, axis=-1, keepdims=True),
                                  approx=True)          # divide -> EUP slot
            oh = jnp.dot(p, vh, preferred_element_type=jnp.float32)   # (S, dh)
            acc_b = acc_b + jnp.dot(oh.astype(jnp.bfloat16),
                                    out_w[c:c + dh, :],
                                    preferred_element_type=jnp.float32)
        attn_rows.append(acc_b)
    attn = attn_rows[0] if bt == 1 else jnp.concatenate(attn_rows, axis=0)
    attn = attn + out_b                                   # (m, d)

    # ---- residual + LayerNorm 1 (post-norm, norm_first=False) ---------------
    y = _layernorm(x + attn, ln1_g, ln1_b, eps)

    # ---- feed-forward (ReLU), bf16 operands / f32 accumulation --------------
    h1 = jnp.dot(y.astype(jnp.bfloat16), ff1_w_ref[0],
                 preferred_element_type=jnp.float32) + ff1_b
    h1 = jnp.maximum(h1, 0.0)
    h2 = jnp.dot(h1.astype(jnp.bfloat16), ff2_w_ref[0],
                 preferred_element_type=jnp.float32) + ff2_b

    # ---- residual + LayerNorm 2 ----------------------------------------------
    z = _layernorm(y + h2, ln2_g, ln2_b, eps)
    act_ref[...] = z                     # carry to next layer (VMEM only)

    # single lane-dense output write after the last layer
    @pl.when(layer == pl.num_programs(1) - 1)
    def _():
        o_ref[...] = z.reshape(bt, s_len, d).astype(o_ref.dtype)


# -----------------------------------------------------------------------------
# wrapper: (S, B, d) seq-first in/out, like PyTorch's default TransformerEncoder
# -----------------------------------------------------------------------------
def transformer_forward(params, x, nhead, eps=1e-5):
    S, B, d = x.shape
    L = params["in_proj_w"].shape[0]
    dff = params["ff1_w"].shape[-1]
    maxd = params["vec"].shape[-1]
    assert d % nhead == 0

    # Batch blocking: keep >=2 blocks when possible (v7x has 2 TensorCores),
    # while amortizing per-layer weight streaming to `nb` fetches per layer.
    nb = 2 if (B >= 2 and B % 2 == 0) else 1
    bt = B // nb

    xb = jnp.transpose(x, (1, 0, 2))     # (B, S, d): batch-major blocks

    def wspec(r, c):                     # per-layer weight slice
        return pl.BlockSpec((1, r, c), lambda i, l: (l, 0, 0))

    out = pl.pallas_call(
        functools.partial(_encoder_kernel, nhead=nhead, bt=bt, eps=eps),
        out_shape=jax.ShapeDtypeStruct((B, S, d), x.dtype),
        grid=(nb, L),
        in_specs=[
            # activation block: index map constant in l -> fetched once / block
            pl.BlockSpec((bt, S, d), lambda i, l: (i, 0, 0)),
            wspec(d, 3 * d),                           # in_proj  (bf16)
            wspec(d, d),                               # out_proj (bf16)
            wspec(d, dff),                             # ffn linear1 (bf16)
            wspec(dff, d),                             # ffn linear2 (bf16)
            pl.BlockSpec((1, 8, maxd), lambda i, l: (l, 0, 0)),  # packed vecs
        ],
        out_specs=pl.BlockSpec((bt, S, d), lambda i, l: (i, 0, 0)),
        scratch_shapes=[pltpu.VMEM((bt * S, d), jnp.float32)],   # layer carry
        compiler_params=pltpu.CompilerParams(
            dimension_semantics=("parallel", "arbitrary"),
            vmem_limit_bytes=_vmem_limit_bytes(bt, S, d, dff, maxd)),
    )(xb,
      params["in_proj_w"], params["out_proj_w"],
      params["ff1_w"], params["ff2_w"], params["vec"])

    return jnp.transpose(out, (1, 0, 2))   # back to (S, B, d)


# -----------------------------------------------------------------------------
# deterministic parameter init (PyTorch Linear-style uniform(+-1/sqrt(fan_in))),
# stacked along a leading layer dim; weight matrices cast to bf16, small
# per-layer vectors packed into one (L, 8, maxd) f32 array.
# NOTE: real PyTorch weights are stored as (d_out, d_in) and would need a
#       transpose when imported.
# -----------------------------------------------------------------------------
def _init_linear(key, din, dout):
    kw, kb = jax.random.split(key)
    bound = 1.0 / math.sqrt(din)
    w = jax.random.uniform(kw, (din, dout), jnp.float32, -bound, bound)
    b = jax.random.uniform(kb, (dout,), jnp.float32, -bound, bound)
    return w, b


def init_params(key, d_model, num_layers, dim_feedforward=2048):
    d, dff = d_model, dim_feedforward
    maxd = max(3 * d, dff)
    in_w, out_w, f1w, f2w, vecs = [], [], [], [], []
    for _ in range(num_layers):
        key, k1, k2, k3, k4 = jax.random.split(key, 5)
        w1, b1 = _init_linear(k1, d, 3 * d)
        w2, b2 = _init_linear(k2, d, d)
        w3, b3 = _init_linear(k3, d, dff)
        w4, b4 = _init_linear(k4, dff, d)
        in_w.append(w1); out_w.append(w2); f1w.append(w3); f2w.append(w4)
        vec = jnp.zeros((8, maxd), jnp.float32)
        vec = vec.at[0, :3 * d].set(b1)      # in_proj bias
        vec = vec.at[1, :d].set(b2)          # out_proj bias
        vec = vec.at[2, :dff].set(b3)        # ffn1 bias
        vec = vec.at[3, :d].set(b4)          # ffn2 bias
        vec = vec.at[4, :d].set(1.0)         # ln1 gamma (beta row 5 stays 0)
        vec = vec.at[6, :d].set(1.0)         # ln2 gamma (beta row 7 stays 0)
        vecs.append(vec)

    as_bf16 = lambda xs: jnp.stack(xs).astype(jnp.bfloat16)
    return dict(
        in_proj_w=as_bf16(in_w), out_proj_w=as_bf16(out_w),
        ff1_w=as_bf16(f1w), ff2_w=as_bf16(f2w),
        vec=jnp.stack(vecs),
    )


# -----------------------------------------------------------------------------
if __name__ == "__main__":
    S, B = 8, 2
    d_model, num_heads, num_layers = 32, 4, 2

    key = jax.random.PRNGKey(0)
    kp, kx = jax.random.split(key)
    params = init_params(kp, d_model, num_layers)
    x = jax.random.normal(kx, (S, B, d_model), jnp.float32)

    fwd = jax.jit(functools.partial(transformer_forward, nhead=num_heads))
    out = fwd(params, x)
    jax.block_until_ready(out)

    assert out.shape == (S, B, d_model)
    assert bool(jnp.all(jnp.isfinite(out)))
    print("KERNEL_OK")
</pallas_src>

<mosaic_0001>
module attributes {stable_mosaic.version = 11 : i64} {
  func.func @_encoder_kernel(%arg0: i32, %arg1: i32, %arg2: memref<1x8x32xf32, #tpu.memory_space<vmem>>, %arg3: memref<1x32x96xbf16, #tpu.memory_space<vmem>>, %arg4: memref<1x32x32xbf16, #tpu.memory_space<vmem>>, %arg5: memref<1x32x2048xbf16, #tpu.memory_space<vmem>>, %arg6: memref<1x2048x32xbf16, #tpu.memory_space<vmem>>, %arg7: memref<1x8x2048xf32, #tpu.memory_space<vmem>>, %arg8: memref<1x8x32xf32, #tpu.memory_space<vmem>>, %arg9: memref<8x32xf32, #tpu.memory_space<vmem>>) attributes {dimension_semantics = [#tpu.dimension_semantics<parallel>, #tpu.dimension_semantics<arbitrary>], iteration_bounds = array<i64: 2, 2>, scalar_prefetch = 0 : i64, scratch_operands = 1 : i64, tpu.core_type = #tpu.core_type<tc>, window_params = [{transform_indices = @transform_0, window_bounds = array<i64: 1, 8, 32>}, {transform_indices = @transform_1, window_bounds = array<i64: 1, 32, 96>}, {transform_indices = @transform_2, window_bounds = array<i64: 1, 32, 32>}, {transform_indices = @transform_3, window_bounds = array<i64: 1, 32, 2048>}, {transform_indices = @transform_4, window_bounds = array<i64: 1, 2048, 32>}, {transform_indices = @transform_5, window_bounds = array<i64: 1, 8, 2048>}, {transform_indices = @transform_6, window_bounds = array<i64: 1, 8, 32>}]} {
    %c0_i32 = arith.constant 0 : i32
    %0 = arith.cmpi eq, %arg1, %c0_i32 : i32
    %1 = arith.extui %0 : i1 to i32
    %c0_i32_0 = arith.constant 0 : i32
    %2 = arith.cmpi ne, %1, %c0_i32_0 : i32
    scf.if %2 {
      %c0_58 = arith.constant 0 : index
      %c0_59 = arith.constant 0 : index
      %c0_60 = arith.constant 0 : index
      %173 = vector.load %arg2[%c0_58, %c0_59, %c0_60] : memref<1x8x32xf32, #tpu.memory_space<vmem>>, vector<1x8x32xf32>
      %174 = vector.shape_cast %173 : vector<1x8x32xf32> to vector<8x32xf32>
      %c0_61 = arith.constant 0 : index
      %c0_62 = arith.constant 0 : index
      %175 = vector.load %arg9[%c0_61, %c0_62] : memref<8x32xf32, #tpu.memory_space<vmem>>, vector<8x32xf32>
      tpu.vector_store %arg9[%c0_61, %c0_62], %174 {strides = array<i32>} : memref<8x32xf32, #tpu.memory_space<vmem>>, vector<8x32xf32>,
    } else {
    }
    %c0 = arith.constant 0 : index
    %c0_1 = arith.constant 0 : index
    %3 = vector.load %arg9[%c0, %c0_1] : memref<8x32xf32, #tpu.memory_space<vmem>>, vector<8x32xf32>
    %4 = arith.truncf %3 : vector<8x32xf32> to vector<8x32xbf16>
    %c0_2 = arith.constant 0 : index
    %c0_3 = arith.constant 0 : index
    %c0_4 = arith.constant 0 : index
    %5 = vector.load %arg7[%c0_2, %c0_3, %c0_4] : memref<1x8x2048xf32, #tpu.memory_space<vmem>>, vector<1x8x2048xf32>
    %6 = vector.shape_cast %5 : vector<1x8x2048xf32> to vector<8x2048xf32>
    %7 = vector.extract_strided_slice %6 {offsets = [0, 0], sizes = [1, 96], strides = [1, 1]} : vector<8x2048xf32> to vector<1x96xf32>
    %8 = vector.extract_strided_slice %6 {offsets = [1, 0], sizes = [1, 32], strides = [1, 1]} : vector<8x2048xf32> to vector<1x32xf32>
    %9 = vector.extract_strided_slice %6 {offsets = [2, 0], sizes = [1, 2048], strides = [1, 1]} : vector<8x2048xf32> to vector<1x2048xf32>
    %10 = vector.extract_strided_slice %6 {offsets = [3, 0], sizes = [1, 32], strides = [1, 1]} : vector<8x2048xf32> to vector<1x32xf32>
    %11 = vector.extract_strided_slice %6 {offsets = [4, 0], sizes = [1, 32], strides = [1, 1]} : vector<8x2048xf32> to vector<1x32xf32>
    %12 = vector.extract_strided_slice %6 {offsets = [5, 0], sizes = [1, 32], strides = [1, 1]} : vector<8x2048xf32> to vector<1x32xf32>
    %13 = vector.extract_strided_slice %6 {offsets = [6, 0], sizes = [1, 32], strides = [1, 1]} : vector<8x2048xf32> to vector<1x32xf32>
    %14 = vector.extract_strided_slice %6 {offsets = [7, 0], sizes = [1, 32], strides = [1, 1]} : vector<8x2048xf32> to vector<1x32xf32>
    %c0_5 = arith.constant 0 : index
    %c0_6 = arith.constant 0 : index
    %c0_7 = arith.constant 0 : index
    %15 = vector.load %arg3[%c0_5, %c0_6, %c0_7] : memref<1x32x96xbf16, #tpu.memory_space<vmem>>, vector<1x32x96xbf16>
    %16 = vector.shape_cast %15 : vector<1x32x96xbf16> to vector<32x96xbf16>
    %cst = arith.constant dense<0.000000e+00> : vector<8x96xf32>
    %17 = tpu.matmul %4, %16, %cst {dimension_numbers = #tpu.dot_dimension_numbers<[1], [0], [0], [1], [0, 0, 1, 1], [], []>} : vector<8x32xbf16>, vector<32x96xbf16>, vector<8x96xf32> -> vector<8x96xf32>
    %18 = vector.broadcast %7 : vector<1x96xf32> to vector<8x96xf32>
    %19 = arith.addf %17, %18 : vector<8x96xf32>
    %c0_8 = arith.constant 0 : index
    %c0_9 = arith.constant 0 : index
    %c0_10 = arith.constant 0 : index
    %20 = vector.load %arg4[%c0_8, %c0_9, %c0_10] : memref<1x32x32xbf16, #tpu.memory_space<vmem>>, vector<1x32x32xbf16>
    %21 = vector.shape_cast %20 : vector<1x32x32xbf16> to vector<32x32xbf16>
    %cst_11 = arith.constant 0.000000e+00 : f32
    %22 = vector.broadcast %cst_11 : f32 to vector<8x32xf32>
    %23 = vector.extract_strided_slice %19 {offsets = [0, 0], sizes = [8, 8], strides = [1, 1]} : vector<8x96xf32> to vector<8x8xf32>
    %24 = vector.extract_strided_slice %19 {offsets = [0, 32], sizes = [8, 8], strides = [1, 1]} : vector<8x96xf32> to vector<8x8xf32>
    %25 = vector.extract_strided_slice %19 {offsets = [0, 64], sizes = [8, 8], strides = [1, 1]} : vector<8x96xf32> to vector<8x8xf32>
    %cst_12 = arith.constant dense<0.000000e+00> : vector<8x8xf32>
    %26 = tpu.matmul %23, %24, %cst_12 {dimension_numbers = #tpu.dot_dimension_numbers<[1], [1], [0], [0], [0, 0, 1, 0], [], []>} : vector<8x8xf32>, vector<8x8xf32>, vector<8x8xf32> -> vector<8x8xf32>
    %cst_13 = arith.constant 0.353553385 : f32
    %27 = vector.broadcast %cst_13 : f32 to vector<8x8xf32>
    %28 = arith.mulf %26, %27 : vector<8x8xf32>
    %cst_14 = arith.constant dense<0xFF800000> : vector<8xf32>
    %29 = vector.multi_reduction <maximumf>, %28, %cst_14 [1] : vector<8x8xf32> to vector<8xf32>
    %30 = vector.shape_cast %29 : vector<8xf32> to vector<8x1xf32>
    %31 = vector.broadcast %30 : vector<8x1xf32> to vector<8x8xf32>
    %32 = arith.subf %28, %31 : vector<8x8xf32>
    %33 = math.exp %32 : vector<8x8xf32>
    %cst_15 = arith.constant dense<0.000000e+00> : vector<8xf32>
    %34 = vector.multi_reduction <add>, %33, %cst_15 [1] : vector<8x8xf32> to vector<8xf32>
    %35 = vector.shape_cast %34 : vector<8xf32> to vector<8x1xf32>
    %36 = tpu.reciprocal %35 {approx = true} : vector<8x1xf32> -> vector<8x1xf32>
    %37 = vector.broadcast %36 : vector<8x1xf32> to vector<8x8xf32>
    %38 = arith.mulf %33, %37 : vector<8x8xf32>
    %cst_16 = arith.constant dense<0.000000e+00> : vector<8x8xf32>
    %39 = tpu.matmul %38, %25, %cst_16 {dimension_numbers = #tpu.dot_dimension_numbers<[1], [0], [0], [1], [0, 0, 1, 1], [], []>} : vector<8x8xf32>, vector<8x8xf32>, vector<8x8xf32> -> vector<8x8xf32>
    %40 = arith.truncf %39 : vector<8x8xf32> to vector<8x8xbf16>
    %41 = vector.extract_strided_slice %21 {offsets = [0, 0], sizes = [8, 32], strides = [1, 1]} : vector<32x32xbf16> to vector<8x32xbf16>
    %cst_17 = arith.constant dense<0.000000e+00> : vector<8x32xf32>
    %42 = tpu.matmul %40, %41, %cst_17 {dimension_numbers = #tpu.dot_dimension_numbers<[1], [0], [0], [1], [0, 0, 1, 1], [], []>} : vector<8x8xbf16>, vector<8x32xbf16>, vector<8x32xf32> -> vector<8x32xf32>
    %43 = arith.addf %22, %42 : vector<8x32xf32>
    %44 = vector.extract_strided_slice %19 {offsets = [0, 8], sizes = [8, 8], strides = [1, 1]} : vector<8x96xf32> to vector<8x8xf32>
    %45 = vector.extract_strided_slice %19 {offsets = [0, 40], sizes = [8, 8], strides = [1, 1]} : vector<8x96xf32> to vector<8x8xf32>
    %46 = vector.extract_strided_slice %19 {offsets = [0, 72], sizes = [8, 8], strides = [1, 1]} : vector<8x96xf32> to vector<8x8xf32>
    %cst_18 = arith.constant dense<0.000000e+00> : vector<8x8xf32>
    %47 = tpu.matmul %44, %45, %cst_18 {dimension_numbers = #tpu.dot_dimension_numbers<[1], [1], [0], [0], [0, 0, 1, 0], [], []>} : vector<8x8xf32>, vector<8x8xf32>, vector<8x8xf32> -> vector<8x8xf32>
    %cst_19 = arith.constant 0.353553385 : f32
    %48 = vector.broadcast %cst_19 : f32 to vector<8x8xf32>
    %49 = arith.mulf %47, %48 : vector<8x8xf32>
    %cst_20 = arith.constant dense<0xFF800000> : vector<8xf32>
    %50 = vector.multi_reduction <maximumf>, %49, %cst_20 [1] : vector<8x8xf32> to vector<8xf32>
    %51 = vector.shape_cast %50 : vector<8xf32> to vector<8x1xf32>
    %52 = vector.broadcast %51 : vector<8x1xf32> to vector<8x8xf32>
    %53 = arith.subf %49, %52 : vector<8x8xf32>
    %54 = math.exp %53 : vector<8x8xf32>
    %cst_21 = arith.constant dense<0.000000e+00> : vector<8xf32>
    %55 = vector.multi_reduction <add>, %54, %cst_21 [1] : vector<8x8xf32> to vector<8xf32>
    %56 = vector.shape_cast %55 : vector<8xf32> to vector<8x1xf32>
    %57 = tpu.reciprocal %56 {approx = true} : vector<8x1xf32> -> vector<8x1xf32>
    %58 = vector.broadcast %57 : vector<8x1xf32> to vector<8x8xf32>
    %59 = arith.mulf %54, %58 : vector<8x8xf32>
    %cst_22 = arith.constant dense<0.000000e+00> : vector<8x8xf32>
    %60 = tpu.matmul %59, %46, %cst_22 {dimension_numbers = #tpu.dot_dimension_numbers<[1], [0], [0], [1], [0, 0, 1, 1], [], []>} : vector<8x8xf32>, vector<8x8xf32>, vector<8x8xf32> -> vector<8x8xf32>
    %61 = arith.truncf %60 : vector<8x8xf32> to vector<8x8xbf16>
    %62 = vector.extract_strided_slice %21 {offsets = [8, 0], sizes = [8, 32], strides = [1, 1]} : vector<32x32xbf16> to vector<8x32xbf16>
    %cst_23 = arith.constant dense<0.000000e+00> : vector<8x32xf32>
    %63 = tpu.matmul %61, %62, %cst_23 {dimension_numbers = #tpu.dot_dimension_numbers<[1], [0], [0], [1], [0, 0, 1, 1], [], []>} : vector<8x8xbf16>, vector<8x32xbf16>, vector<8x32xf32> -> vector<8x32xf32>
    %64 = arith.addf %43, %63 : vector<8x32xf32>
    %65 = vector.extract_strided_slice %19 {offsets = [0, 16], sizes = [8, 8], strides = [1, 1]} : vector<8x96xf32> to vector<8x8xf32>
    %66 = vector.extract_strided_slice %19 {offsets = [0, 48], sizes = [8, 8], strides = [1, 1]} : vector<8x96xf32> to vector<8x8xf32>
    %67 = vector.extract_strided_slice %19 {offsets = [0, 80], sizes = [8, 8], strides = [1, 1]} : vector<8x96xf32> to vector<8x8xf32>
    %cst_24 = arith.constant dense<0.000000e+00> : vector<8x8xf32>
    %68 = tpu.matmul %65, %66, %cst_24 {dimension_numbers = #tpu.dot_dimension_numbers<[1], [1], [0], [0], [0, 0, 1, 0], [], []>} : vector<8x8xf32>, vector<8x8xf32>, vector<8x8xf32> -> vector<8x8xf32>
    %cst_25 = arith.constant 0.353553385 : f32
    %69 = vector.broadcast %cst_25 : f32 to vector<8x8xf32>
    %70 = arith.mulf %68, %69 : vector<8x8xf32>
    %cst_26 = arith.constant dense<0xFF800000> : vector<8xf32>
    %71 = vector.multi_reduction <maximumf>, %70, %cst_26 [1] : vector<8x8xf32> to vector<8xf32>
    %72 = vector.shape_cast %71 : vector<8xf32> to vector<8x1xf32>
    %73 = vector.broadcast %72 : vector<8x1xf32> to vector<8x8xf32>
    %74 = arith.subf %70, %73 : vector<8x8xf32>
    %75 = math.exp %74 : vector<8x8xf32>
    %cst_27 = arith.constant dense<0.000000e+00> : vector<8xf32>
    %76 = vector.multi_reduction <add>, %75, %cst_27 [1] : vector<8x8xf32> to vector<8xf32>
    %77 = vector.shape_cast %76 : vector<8xf32> to vector<8x1xf32>
    %78 = tpu.reciprocal %77 {approx = true} : vector<8x1xf32> -> vector<8x1xf32>
    %79 = vector.broadcast %78 : vector<8x1xf32> to vector<8x8xf32>
    %80 = arith.mulf %75, %79 : vector<8x8xf32>
    %cst_28 = arith.constant dense<0.000000e+00> : vector<8x8xf32>
    %81 = tpu.matmul %80, %67, %cst_28 {dimension_numbers = #tpu.dot_dimension_numbers<[1], [0], [0], [1], [0, 0, 1, 1], [], []>} : vector<8x8xf32>, vector<8x8xf32>, vector<8x8xf32> -> vector<8x8xf32>
    %82 = arith.truncf %81 : vector<8x8xf32> to vector<8x8xbf16>
    %83 = vector.extract_strided_slice %21 {offsets = [16, 0], sizes = [8, 32], strides = [1, 1]} : vector<32x32xbf16> to vector<8x32xbf16>
    %cst_29 = arith.constant dense<0.000000e+00> : vector<8x32xf32>
    %84 = tpu.matmul %82, %83, %cst_29 {dimension_numbers = #tpu.dot_dimension_numbers<[1], [0], [0], [1], [0, 0, 1, 1], [], []>} : vector<8x8xbf16>, vector<8x32xbf16>, vector<8x32xf32> -> vector<8x32xf32>
    %85 = arith.addf %64, %84 : vector<8x32xf32>
    %86 = vector.extract_strided_slice %19 {offsets = [0, 24], sizes = [8, 8], strides = [1, 1]} : vector<8x96xf32> to vector<8x8xf32>
    %87 = vector.extract_strided_slice %19 {offsets = [0, 56], sizes = [8, 8], strides = [1, 1]} : vector<8x96xf32> to vector<8x8xf32>
    %88 = vector.extract_strided_slice %19 {offsets = [0, 88], sizes = [8, 8], strides = [1, 1]} : vector<8x96xf32> to vector<8x8xf32>
    %cst_30 = arith.constant dense<0.000000e+00> : vector<8x8xf32>
    %89 = tpu.matmul %86, %87, %cst_30 {dimension_numbers = #tpu.dot_dimension_numbers<[1], [1], [0], [0], [0, 0, 1, 0], [], []>} : vector<8x8xf32>, vector<8x8xf32>, vector<8x8xf32> -> vector<8x8xf32>
    %cst_31 = arith.constant 0.353553385 : f32
    %90 = vector.broadcast %cst_31 : f32 to vector<8x8xf32>
    %91 = arith.mulf %89, %90 : vector<8x8xf32>
    %cst_32 = arith.constant dense<0xFF800000> : vector<8xf32>
    %92 = vector.multi_reduction <maximumf>, %91, %cst_32 [1] : vector<8x8xf32> to vector<8xf32>
    %93 = vector.shape_cast %92 : vector<8xf32> to vector<8x1xf32>
    %94 = vector.broadcast %93 : vector<8x1xf32> to vector<8x8xf32>
    %95 = arith.subf %91, %94 : vector<8x8xf32>
    %96 = math.exp %95 : vector<8x8xf32>
    %cst_33 = arith.constant dense<0.000000e+00> : vector<8xf32>
    %97 = vector.multi_reduction <add>, %96, %cst_33 [1] : vector<8x8xf32> to vector<8xf32>
    %98 = vector.shape_cast %97 : vector<8xf32> to vector<8x1xf32>
    %99 = tpu.reciprocal %98 {approx = true} : vector<8x1xf32> -> vector<8x1xf32>
    %100 = vector.broadcast %99 : vector<8x1xf32> to vector<8x8xf32>
    %101 = arith.mulf %96, %100 : vector<8x8xf32>
    %cst_34 = arith.constant dense<0.000000e+00> : vector<8x8xf32>
    %102 = tpu.matmul %101, %88, %cst_34 {dimension_numbers = #tpu.dot_dimension_numbers<[1], [0], [0], [1], [0, 0, 1, 1], [], []>} : vector<8x8xf32>, vector<8x8xf32>, vector<8x8xf32> -> vector<8x8xf32>
    %103 = arith.truncf %102 : vector<8x8xf32> to vector<8x8xbf16>
    %104 = vector.extract_strided_slice %21 {offsets = [24, 0], sizes = [8, 32], strides = [1, 1]} : vector<32x32xbf16> to vector<8x32xbf16>
    %cst_35 = arith.constant dense<0.000000e+00> : vector<8x32xf32>
    %105 = tpu.matmul %103, %104, %cst_35 {dimension_numbers = #tpu.dot_dimension_numbers<[1], [0], [0], [1], [0, 0, 1, 1], [], []>} : vector<8x8xbf16>, vector<8x32xbf16>, vector<8x32xf32> -> vector<8x32xf32>
    %106 = arith.addf %85, %105 : vector<8x32xf32>
    %107 = vector.broadcast %8 : vector<1x32xf32> to vector<8x32xf32>
    %108 = arith.addf %106, %107 : vector<8x32xf32>
    %109 = arith.addf %3, %108 : vector<8x32xf32>
    %cst_36 = arith.constant dense<0.000000e+00> : vector<8xf32>
    %110 = vector.multi_reduction <add>, %109, %cst_36 [1] : vector<8x32xf32> to vector<8xf32>
    %111 = vector.shape_cast %110 : vector<8xf32> to vector<8x1xf32>
    %cst_37 = arith.constant 3.200000e+01 : f32
    %112 = vector.broadcast %cst_37 : f32 to vector<8x1xf32>
    %113 = arith.divf %111, %112 : vector<8x1xf32>
    %114 = vector.broadcast %113 : vector<8x1xf32> to vector<8x32xf32>
    %115 = arith.subf %109, %114 : vector<8x32xf32>
    %116 = arith.mulf %115, %115 : vector<8x32xf32>
    %cst_38 = arith.constant dense<0.000000e+00> : vector<8xf32>
    %117 = vector.multi_reduction <add>, %116, %cst_38 [1] : vector<8x32xf32> to vector<8xf32>
    %118 = vector.shape_cast %117 : vector<8xf32> to vector<8x1xf32>
    %cst_39 = arith.constant 3.200000e+01 : f32
    %119 = vector.broadcast %cst_39 : f32 to vector<8x1xf32>
    %120 = arith.divf %118, %119 : vector<8x1xf32>
    %121 = vector.broadcast %113 : vector<8x1xf32> to vector<8x32xf32>
    %122 = arith.subf %109, %121 : vector<8x32xf32>
    %cst_40 = arith.constant 9.99999974E-6 : f32
    %123 = vector.broadcast %cst_40 : f32 to vector<8x1xf32>
    %124 = arith.addf %120, %123 : vector<8x1xf32>
    %125 = math.rsqrt %124 : vector<8x1xf32>
    %126 = vector.broadcast %125 : vector<8x1xf32> to vector<8x32xf32>
    %127 = arith.mulf %122, %126 : vector<8x32xf32>
    %128 = vector.broadcast %11 : vector<1x32xf32> to vector<8x32xf32>
    %129 = arith.mulf %127, %128 : vector<8x32xf32>
    %130 = vector.broadcast %12 : vector<1x32xf32> to vector<8x32xf32>
    %131 = arith.addf %129, %130 : vector<8x32xf32>
    %132 = arith.truncf %131 : vector<8x32xf32> to vector<8x32xbf16>
    %c0_41 = arith.constant 0 : index
    %c0_42 = arith.constant 0 : index
    %c0_43 = arith.constant 0 : index
    %133 = vector.load %arg5[%c0_41, %c0_42, %c0_43] : memref<1x32x2048xbf16, #tpu.memory_space<vmem>>, vector<1x32x2048xbf16>
    %134 = vector.shape_cast %133 : vector<1x32x2048xbf16> to vector<32x2048xbf16>
    %cst_44 = arith.constant dense<0.000000e+00> : vector<8x2048xf32>
    %135 = tpu.matmul %132, %134, %cst_44 {dimension_numbers = #tpu.dot_dimension_numbers<[1], [0], [0], [1], [0, 0, 1, 1], [], []>} : vector<8x32xbf16>, vector<32x2048xbf16>, vector<8x2048xf32> -> vector<8x2048xf32>
    %136 = vector.broadcast %9 : vector<1x2048xf32> to vector<8x2048xf32>
    %137 = arith.addf %135, %136 : vector<8x2048xf32>
    %cst_45 = arith.constant 0.000000e+00 : f32
    %138 = vector.broadcast %cst_45 : f32 to vector<8x2048xf32>
    %139 = arith.maximumf %137, %138 : vector<8x2048xf32>
    %140 = arith.truncf %139 : vector<8x2048xf32> to vector<8x2048xbf16>
    %c0_46 = arith.constant 0 : index
    %c0_47 = arith.constant 0 : index
    %c0_48 = arith.constant 0 : index
    %141 = vector.load %arg6[%c0_46, %c0_47, %c0_48] : memref<1x2048x32xbf16, #tpu.memory_space<vmem>>, vector<1x2048x32xbf16>
    %142 = vector.shape_cast %141 : vector<1x2048x32xbf16> to vector<2048x32xbf16>
    %cst_49 = arith.constant dense<0.000000e+00> : vector<8x32xf32>
    %143 = tpu.matmul %140, %142, %cst_49 {dimension_numbers = #tpu.dot_dimension_numbers<[1], [0], [0], [1], [0, 0, 1, 1], [], []>} : vector<8x2048xbf16>, vector<2048x32xbf16>, vector<8x32xf32> -> vector<8x32xf32>
    %144 = vector.broadcast %10 : vector<1x32xf32> to vector<8x32xf32>
    %145 = arith.addf %143, %144 : vector<8x32xf32>
    %146 = arith.addf %131, %145 : vector<8x32xf32>
    %cst_50 = arith.constant dense<0.000000e+00> : vector<8xf32>
    %147 = vector.multi_reduction <add>, %146, %cst_50 [1] : vector<8x32xf32> to vector<8xf32>
    %148 = vector.shape_cast %147 : vector<8xf32> to vector<8x1xf32>
    %cst_51 = arith.constant 3.200000e+01 : f32
    %149 = vector.broadcast %cst_51 : f32 to vector<8x1xf32>
    %150 = arith.divf %148, %149 : vector<8x1xf32>
    %151 = vector.broadcast %150 : vector<8x1xf32> to vector<8x32xf32>
    %152 = arith.subf %146, %151 : vector<8x32xf32>
    %153 = arith.mulf %152, %152 : vector<8x32xf32>
    %cst_52 = arith.constant dense<0.000000e+00> : vector<8xf32>
    %154 = vector.multi_reduction <add>, %153, %cst_52 [1] : vector<8x32xf32> to vector<8xf32>
    %155 = vector.shape_cast %154 : vector<8xf32> to vector<8x1xf32>
    %cst_53 = arith.constant 3.200000e+01 : f32
    %156 = vector.broadcast %cst_53 : f32 to vector<8x1xf32>
    %157 = arith.divf %155, %156 : vector<8x1xf32>
    %158 = vector.broadcast %150 : vector<8x1xf32> to vector<8x32xf32>
    %159 = arith.subf %146, %158 : vector<8x32xf32>
    %cst_54 = arith.constant 9.99999974E-6 : f32
    %160 = vector.broadcast %cst_54 : f32 to vector<8x1xf32>
    %161 = arith.addf %157, %160 : vector<8x1xf32>
    %162 = math.rsqrt %161 : vector<8x1xf32>
    %163 = vector.broadcast %162 : vector<8x1xf32> to vector<8x32xf32>
    %164 = arith.mulf %159, %163 : vector<8x32xf32>
    %165 = vector.broadcast %13 : vector<1x32xf32> to vector<8x32xf32>
    %166 = arith.mulf %164, %165 : vector<8x32xf32>
    %167 = vector.broadcast %14 : vector<1x32xf32> to vector<8x32xf32>
    %168 = arith.addf %166, %167 : vector<8x32xf32>
    %c0_55 = arith.constant 0 : index
    %c0_56 = arith.constant 0 : index
    %169 = vector.load %arg9[%c0_55, %c0_56] : memref<8x32xf32, #tpu.memory_space<vmem>>, vector<8x32xf32>
    tpu.vector_store %arg9[%c0_55, %c0_56], %168 {strides = array<i32>} : memref<8x32xf32, #tpu.memory_space<vmem>>, vector<8x32xf32>,
    %c1_i32 = arith.constant 1 : i32
    %170 = arith.cmpi eq, %arg1, %c1_i32 : i32
    %171 = arith.extui %170 : i1 to i32
    %c0_i32_57 = arith.constant 0 : i32
    %172 = arith.cmpi ne, %171, %c0_i32_57 : i32
    scf.if %172 {
      %173 = vector.shape_cast %168 : vector<8x32xf32> to vector<1x8x32xf32>
      %c0_58 = arith.constant 0 : index
      %c0_59 = arith.constant 0 : index
      %c0_60 = arith.constant 0 : index
      %174 = vector.load %arg8[%c0_58, %c0_59, %c0_60] : memref<1x8x32xf32, #tpu.memory_space<vmem>>, vector<1x8x32xf32>
      tpu.vector_store %arg8[%c0_58, %c0_59, %c0_60], %173 {strides = array<i32>} : memref<1x8x32xf32, #tpu.memory_space<vmem>>, vector<1x8x32xf32>,
    } else {
    }
    return
  }
  func.func @transform_0(%arg0: i32, %arg1: i32) -> (i32, i32, i32) {
    %c0_i32 = arith.constant 0 : i32
    %c0_i32_0 = arith.constant 0 : i32
    %c0_i32_1 = arith.constant 0 : i32
    return %arg0, %c0_i32, %c0_i32_0 : i32, i32, i32
  }
  func.func @transform_1(%arg0: i32, %arg1: i32) -> (i32, i32, i32) {
    %c0_i32 = arith.constant 0 : i32
    %c0_i32_0 = arith.constant 0 : i32
    %c0_i32_1 = arith.constant 0 : i32
    return %arg1, %c0_i32, %c0_i32_0 : i32, i32, i32
  }
  func.func @transform_2(%arg0: i32, %arg1: i32) -> (i32, i32, i32) {
    %c0_i32 = arith.constant 0 : i32
    %c0_i32_0 = arith.constant 0 : i32
    %c0_i32_1 = arith.constant 0 : i32
    return %arg1, %c0_i32, %c0_i32_0 : i32, i32, i32
  }
  func.func @transform_3(%arg0: i32, %arg1: i32) -> (i32, i32, i32) {
    %c0_i32 = arith.constant 0 : i32
    %c0_i32_0 = arith.constant 0 : i32
    %c0_i32_1 = arith.constant 0 : i32
    return %arg1, %c0_i32, %c0_i32_0 : i32, i32, i32
  }
  func.func @transform_4(%arg0: i32, %arg1: i32) -> (i32, i32, i32) {
    %c0_i32 = arith.constant 0 : i32
    %c0_i32_0 = arith.constant 0 : i32
    %c0_i32_1 = arith.constant 0 : i32
    return %arg1, %c0_i32, %c0_i32_0 : i32, i32, i32
  }
  func.func @transform_5(%arg0: i32, %arg1: i32) -> (i32, i32, i32) {
    %c0_i32 = arith.constant 0 : i32
    %c0_i32_0 = arith.constant 0 : i32
    %c0_i32_1 = arith.constant 0 : i32
    return %arg1, %c0_i32, %c0_i32_0 : i32, i32, i32
  }
  func.func @transform_6(%arg0: i32, %arg1: i32) -> (i32, i32, i32) {
    %c0_i32 = arith.constant 0 : i32
    %c0_i32_0 = arith.constant 0 : i32
    %c0_i32_1 = arith.constant 0 : i32
    return %arg0, %c0_i32, %c0_i32_0 : i32, i32, i32
  }
}

</mosaic_0001>

<bundles_post_ra>
// kernel: transformer_forward.1
= control target key start
LH: loop header
LB: loop body
LE: loop exit
PB: predicated region body
PF: predicated region fallthrough
CT: control target
= control target key end

     0   :  { %s3679_s21 = smov 0   ;;  %s3681_s22 = smov 0   ;;  %s4091_s0 = inlined_call_operand.vmem [shape: f32[2,8,32], index: 0, kind: input, shape index: {}]   ;;  %s4092_s1 = inlined_call_operand.vmem [shape: bf16[2,32,96], index: 1, kind: input, shape index: {}]   ;;  %s4093_s2 = inlined_call_operand.vmem [shape: bf16[2,32,32], index: 2, kind: input, shape index: {}]   ;;  %s4094_s3 = inlined_call_operand.vmem [shape: bf16[2,32,2048], index: 3, kind: input, shape index: {}]   ;;  %s4095_s4 = inlined_call_operand.vmem [shape: bf16[2,2048,32], index: 4, kind: input, shape index: {}]   ;;  %s4096_s5 = inlined_call_operand.vmem [shape: f32[2,8,2048], index: 5, kind: input, shape index: {}]   ;;  %s4097_s6 = inlined_call_operand.vmem [shape: f32[2,8,32], index: 6, kind: output, shape index: {}]  }
   0x1   :  { %4098 = sst [smem:[#allocation3_spill]] %s4091_s0  ;;  %s3683_s23 = smov 0  }
   0x2   :  { %4099 = sst [smem:[#allocation4_spill]] %s4092_s1  ;;  %s3685_s24 = smov 0  }
   0x3   :  { %s3687_s25 = smov 0  }
   0x4 LB: > { %s25_s26 = sadd.s32 1, %s3622_s23  ;;  %s28_s27 = sadd.s32 1, %s3626_s24  ;;  %s3630_s25 = sphi %s3687_s25, %s16_s25   ;;  %s3626_s24 = sphi %s3685_s24, %s4105_s24   ;;  %s3622_s23 = sphi %s3683_s23, %s4104_s23   ;;  %s3618_s22 = sphi %s3681_s22, %s4103_s22   ;;  %s3614_s21 = sphi %s3679_s21, %s4102_s21  }
   0x5   : > { %p26_p0 = scmp.ge.s32.totalorder %s25_s26, 2  ;;  %p2652_p1 = scmp.ge.s32.totalorder %s3630_s25, 1 }
   0x6   : > { %p273_p2 = scmp.lt.s32.totalorder %s3630_s25, 5 }
   0x7   : > { %s4107_s26 = smov (%p26_p0, %s25_s26), 0  ;;  %s4109_s27 = smov (!%p26_p0, %s28_s27), %s3626_s24 }
   0x8   : > { %p274_p3 = pnand %p2652_p1, %p273_p2  ;;  %p30_p4 = scmp.ge.s32.totalorder %s4109_s27, 2 }
   0x9   : > { %p326_p5 = scmp.lt.s32.totalorder (!%p274_p3), %s3618_s22, 1  ;;  %p330_p6 = scmp.lt.s32.totalorder (!%p274_p3), %s3614_s21, 1 }
   0xa   : > { %s4111_s27 = smov (%p30_p4, %s4109_s27), 0  ;;  %277 = sbr.rel (%p274_p3) target bundleno = 2626 (0xa42), region = 44 }
   0xb   : > { %s4100_s0 = sld [smem:[#allocation3_spill]] (!%p274_p3)  ;;  %p2665_p7 = scmp.ne.s32.totalorder (!%p274_p3), %s3614_s21, 0 }
   0xc   : > { %s4101_s1 = sld [smem:[#allocation4_spill]] (!%p274_p3) }
   0xf   : > { %s4113_s22 = smov (!%p326_p5, %s3618_s22), 1 }
  0x10   : > { %s331_s28 = scalar_select %p330_p6, %s3614_s21, 1 }
  0x11   : > { %s2653_s29 = sshll.u32 %s4113_s22, 3 }
  0x12   : > { %s329_s8 = scalar_lea.vmem %s4100_s0, %s2653_s29  ;;  %s3350_s9 = sshll.u32 %s331_s28, 4 }
  0x13   : > { %s334_s12 = scalar_lea.vmem %s4101_s1, %s3350_s9  ;;  %s3722_s15 = scalar_lea.vmem %s4093_s2, %s3350_s9 }
  0x14   : > { %s3352_s16 = sshll.u32 %s331_s28, 8  ;;  %s3353_s17 = sshll.u32 %s331_s28, 10 }
  0x15   : > { %s3727_s20 = scalar_lea.vmem %s4094_s3, %s3352_s16  ;;  %s3732_s7 = scalar_lea.vmem %s4095_s4, %s3353_s17 }
  0x16   : > { %s3354_s0 = sshll.u32 %s331_s28, 7  ;;  %s3737_s1 = scalar_lea.vmem %s4097_s6, %s2653_s29 }
  0x17   : > { %s3742_s14 = scalar_lea.vmem %s4096_s5, %s3354_s0  ;;  %363 = sbr.rel (%p2665_p7) target bundleno = 30 (0x1e), region = 48 }
  0x1c   : > { %v364_v0 = vld [vmem:[%s329_s8] sm:$0xff]  ;;  %vm365_vm0 = vcmask 261120  }
  0x1d   : > { %366 = vst.msk [vmem:[#allocation2] sm:$0xff] %vm365_vm0, %v364_v0 }
  0x1e PF: > { %v3356_v1 = vld [vmem:[%s334_s12 + $0x8] sm:$0xff]  ;;  %v3355_v2 = vld [vmem:[%s334_s12] sm:$0xff]  ;;  %vm402_vm1 = vcmask 261120   ;;  %s3632_s0 = smov 120   ;;  %s3633_s28 = smov 96   ;;  %vm426_vm2 = vcmask 64512  }
  0x1f   : > { %412 = vmatpush.bf16.msra.mxu0 %v3356_v1  ;;  %v3751_v5 = vld [vmem:[%s3742_s14] sm:$0xff]  ;;  %s3634_s29 = smov 88   ;;  %s3635_s8 = smov 112   ;;  %vm560_vm3 = vcmask 1043456  }
  0x20   : > { %v389_v6 = vperm.slane %v3751_v5, 0  ;;  %s3636_s12 = smov 72   ;;  %s3637_s16 = smov 104   ;;  %v419_v39 = vld [vmem:[%s3722_s15] sm:$0xf] }
  0x21   : > { %s3638_s17 = smov 64   ;;  %s3639_s18 = smov 56   ;;  %v581_v40 = vsel %vm560_vm3, %v419_v39, 0  ;;  %v420_v41 = vld [vmem:[%s3722_s15 + $0x4] sm:$0xf] }
  0x22   : > { %s3640_s19 = smov 80   ;;  %v562_v42 = vsel %vm560_vm3, %v420_v41, 0  ;;  %s3641_s22 = smov 40  }
  0x23   : > { %413 = vmatpush.bf16.msra.mxu0 %v3355_v2  ;;  %s3642_s30 = smov 48   ;;  %p3347_p8 = scmp.ne.s32.totalorder %s3614_s21, 1 }
  0x24   : > { %v3745_v3 = vld [vmem:[#allocation2] sm:$0xff] }
  0x25   : > { %v368_v4 = vpack.c.bf16 %v3745_v3, %v3745_v3 }
  0x27   : > { %2674 = vmatmul.msk.bf16.vlgmr.msra.gmra.mxu0 %vm402_vm1, %v368_v4  ;;  %v421_v4 = vld [vmem:[%s3722_s15 + $0x8] sm:$0xf] }
  0xa4   : > { %v415_v7 = vpop.f32.mrf.mxu0 }
  0xa5   : > { %v3754_v8 = vadd.f32 %v415_v7, %v389_v6  ;;  %v667_v6 = vsel %vm560_vm3, %v421_v4, 0  ;;  %v2703_v4 = vld [vmem:[%s3727_s20 + $0x48] sm:$0xf0] }
  0xa7   : > { %490 = vrot.lane.b32.xlu1 %v3754_v8, %s3632_s0  ;;  %424 = vrot.lane.b32.xlu0 %v3754_v8, %s3633_s28 }
  0xac   : > { %v417_v9 = vpop.f32.mrf.mxu0 }
  0xaf   : > { %492 = vrot.lane.b32.xlu0 %v3754_v8, %s3634_s29 }
 0x119   : > { %v425_v10 = vpop.permute.xlu0 %424  ;;  %v491_v12 = vpop.permute.xlu1 %490 }
 0x11a   : > { %2675 = vmatpush.xpose.msk.msra.mxu1 %vm426_vm2, %v425_v10 }
 0x11d   : > { %2676 = vmatmul.msk.f32.vlgmr.msra.gmra.mxu1 %vm426_vm2, %v3754_v8 }
 0x11e   : > { %571 = vmatpush.bf16.msrb.mxu1 %v562_v42 }
 0x121   : > { %v493_v11 = vpop.permute.xlu0 %492 }
 0x122   : > { %2678 = vmatpush.xpose.msk.msra.mxu3 %vm426_vm2, %v493_v11 }
 0x125   : > { %2679 = vmatmul.msk.f32.vlgmr.msra.gmra.mxu3 %vm426_vm2, %v491_v12 }
 0x126   : > { %590 = vmatpush.bf16.msrb.mxu3 %v581_v40 }
 0x19a   : > { %v448_v13 = vpop.f32.mrf.mxu1 }
 0x19b   : > { %v451_v14 = vmul.f32 0.35355338, %v448_v13 }
 0x19d   : > { %v452_v15 = vsel %vm426_vm2, %v451_v14, -inf }
 0x19e   : > { %453 = vmax.xlane.f32.xlu1 %v452_v15 }
 0x1a8   : > { %v515_v16 = vpop.f32.mrf.mxu3 }
 0x1a9   : > { %v518_v17 = vmul.f32 0.35355338, %v515_v16 }
 0x1ab   : > { %v519_v18 = vsel %vm426_vm2, %v518_v17, -inf }
 0x1ac   : > { %520 = vmax.xlane.f32.xlu2 %v519_v18 }
 0x1b7   : > { %596 = vrot.lane.b32.xlu1 %v3754_v8, %s3635_s8 }
 0x1bf   : > { %685 = vrot.lane.b32.xlu1 %v3754_v8, %s3636_s12 }
 0x1c7   : > { %683 = vrot.lane.b32.xlu1 %v3754_v8, %s3637_s16 }
 0x211   : > { %v454_v19 = vpop.xlane.xlu1 %453 }
 0x212   : > { %v455_v20 = vsub.f32 %v451_v14, %v454_v19 }
 0x214   : > { %v456_v21 = vmul.f32 1.442695, %v455_v20 }
 0x216   : > { %3569 = vpow2.f32 %v456_v21 }
 0x21c   : > { %v3570_v22 = vpop.eup %3569 }
 0x21d   : > { %v458_v23 = vsel %vm426_vm2, %v3570_v22, 0.0 }
 0x21e   : > { %459 = vadd.xlane.f32.xlu2 %v458_v23  ;;  %v422_v23 = vld [vmem:[%s3722_s15 + $0xc] sm:$0xf] }
 0x21f   : > { %v521_v24 = vpop.xlane.xlu2 %520 }
 0x220   : > { %v522_v25 = vsub.f32 %v518_v17, %v521_v24  ;;  %v754_v24 = vsel %vm560_vm3, %v422_v23, 0  ;;  %v3367_v23 = vld [vmem:[%s3727_s20 + $0x4c] sm:$0xf0] }
 0x221   : > { %763 = vmatpush.bf16.msrb.mxu0 %v754_v24  ;;  %v3359_v24 = vld [vmem:[%s3727_s20 + $0x14] sm:$0xf] }
 0x222   : > { %v523_v26 = vmul.f32 1.442695, %v522_v25 }
 0x224   : > { %3571 = vpow2.f32 %v523_v26 }
 0x229   : > { %v597_v38 = vpop.permute.xlu1 %596 }
 0x22a   : > { %v3572_v27 = vpop.eup %3571 }
 0x22b   : > { %v525_v28 = vsel %vm426_vm2, %v3572_v27, 0.0 }
 0x22c   : > { %526 = vadd.xlane.f32.xlu0 %v525_v28 }
 0x231   : > { %v686_v63 = vpop.permute.xlu1 %685 }
 0x236   : > { %463 = vrot.lane.b32.xlu2 %v3754_v8, %s3638_s17 }
 0x239   : > { %v684_v2 = vpop.permute.xlu1 %683 }
 0x23e   : > { %530 = vrot.lane.b32.xlu2 %v3754_v8, %s3639_s18 }
 0x246   : > { %598 = vrot.lane.b32.xlu2 %v3754_v8, %s3640_s19 }
 0x291   : > { %v460_v29 = vpop.xlane.xlu2 %459 }
 0x292   : > { %3573 = vrcp.f32 %v460_v29 }
 0x298   : > { %v3574_v30 = vpop.eup %3573 }
 0x299   : > { %v464_v31 = vpop.permute.xlu2 %463  ;;  %v462_v32 = vmul.f32 %v3574_v30, %v3570_v22 }
 0x29a   : > { %484 = vmatpush.msra.mxu2 %v464_v31 }
 0x29b   : > { %2677 = vmatmul.msk.f32.vlgmr.msra.gmra.mxu2 %vm426_vm2, %v462_v32 }
 0x29f   : > { %v527_v33 = vpop.xlane.xlu0 %526 }
 0x2a0   : > { %3575 = vrcp.f32 %v527_v33 }
 0x2a1   : > { %v531_v34 = vpop.permute.xlu2 %530 }
 0x2a2   : > { %551 = vmatpush.msrb.mxu2 %v531_v34  ;;  %v3643_v34 = vmov 32.0  }
 0x2a6   : > { %v3576_v35 = vpop.eup %3575 }
 0x2a7   : > { %v529_v36 = vmul.f32 %v3576_v35, %v3572_v27  ;;  %v770_v27 = vperm.slane %v3751_v5, 1 }
 0x2a9   : > { %2680 = vmatmul.msk.f32.vlgmr.msrb.gmra.mxu2 %vm426_vm2, %v529_v36  ;;  %v599_v37 = vpop.permute.xlu2 %598 }
 0x2aa   : > { %2683 = vmatpush.xpose.msk.msra.mxu2 %vm426_vm2, %v599_v37 }
 0x2ae   : > { %676 = vmatpush.bf16.msrb.mxu2 %v667_v6 }
 0x2b1   : > { %2684 = vmatmul.msk.f32.vlgmr.msra.gmra.mxu2 %vm426_vm2, %v597_v38 }
 0x31e   : > { %v486_v43 = vpop.f32.mrf.mxu2 }
 0x31f   : > { %v489_v44 = vpack.c.bf16 %v486_v43, %v486_v43 }
 0x321   : > { %2682 = vmatmul.msk.bf16.vlgmr.msrb.gmra.mxu3 %vm426_vm2, %v489_v44 }
 0x32c   : > { %v553_v45 = vpop.f32.mrf.mxu2 }
 0x32d   : > { %v556_v46 = vpack.c.bf16 %v553_v45, %v553_v45  ;;  %v2757_v45 = vld [vmem:[%s3727_s20 + $0x80] sm:$0xf] }
 0x32f   : > { %2681 = vmatmul.msk.bf16.vlgmr.msrb.gmra.mxu1 %vm426_vm2, %v556_v46  ;;  %v3381_v46 = vld [vmem:[%s3727_s20 + $0xbc] sm:$0xf0] }
 0x334   : > { %v621_v47 = vpop.f32.mrf.mxu2 }
 0x335   : > { %v624_v48 = vmul.f32 0.35355338, %v621_v47  ;;  %v3373_v47 = vld [vmem:[%s3727_s20 + $0x84] sm:$0xf] }
 0x337   : > { %v625_v49 = vsel %vm426_vm2, %v624_v48, -inf }
 0x338   : > { %626 = vmax.xlane.f32.xlu2 %v625_v49  ;;  %v2759_v49 = vld [vmem:[%s3727_s20 + $0xc0] sm:$0xf0] }
 0x350   : > { %723 = vrot.lane.b32.xlu2 %v3754_v8, %s3641_s22 }
 0x3a4   : > { %v592_v50 = vpop.f32.mrf.mxu3 }
 0x3ab   : > { %v627_v51 = vpop.xlane.xlu2 %626 }
 0x3ac   : > { %v628_v52 = vsub.f32 %v624_v48, %v627_v51  ;;  %v573_v53 = vpop.f32.mrf.mxu1  ;;  %v594_v54 = vpop.f32.mrf.mxu3  ;;  %v2758_v48 = vor.u32 %v3381_v46, %v2757_v45  ;;  %v3382_v51 = vld [vmem:[%s3727_s20 + $0xc4] sm:$0xf0]  ;;  %v2789_v46 = vld [vmem:[%s3727_s20 + $0xa0] sm:$0xf] }
 0x3ad   : > { %v593_v55 = vadd.f32 %v592_v50, %v573_v53  ;;  %v2765_v50 = vld [vmem:[%s3727_s20 + $0x88] sm:$0xf]  ;;  %v3374_v54 = vld [vmem:[%s3727_s20 + $0x8c] sm:$0xf] }
 0x3ae   : > { %v629_v56 = vmul.f32 1.442695, %v628_v52  ;;  %v2762_v52 = vor.u32 %v3373_v47, %v2759_v49  ;;  %v2766_v53 = vor.u32 %v3382_v51, %v2765_v50  ;;  %v3385_v47 = vld [vmem:[%s3727_s20 + $0xdc] sm:$0xf0]  ;;  %v2791_v49 = vld [vmem:[%s3727_s20 + $0xe0] sm:$0xf0] }
 0x3af   : > { %v2797_v50 = vld [vmem:[%s3727_s20 + $0xa8] sm:$0xf] }
 0x3b0   : > { %3577 = vpow2.f32 %v629_v56  ;;  %1050 = vmatpush.bf16.msra.mxu2 %v2766_v53  ;;  %v3378_v53 = vld [vmem:[%s3727_s20 + $0xac] sm:$0xf] }
 0x3b3   : > { %v724_v57 = vpop.permute.xlu2 %723 }
 0x3b4   : > { %v575_v58 = vpop.f32.mrf.mxu1  ;;  %744 = vmatpush.msra.mxu3 %v724_v57  ;;  %v2693_v57 = vld [vmem:[%s3727_s20] sm:$0xf] }
 0x3b5   : > { %v3365_v58 = vld [vmem:[%s3727_s20 + $0x3c] sm:$0xf0] }
 0x3b6   : > { %v3578_v59 = vpop.eup %3577  ;;  %1037 = vmatpush.bf16.msrb.mxu3 %v2762_v52  ;;  %v3386_v52 = vld [vmem:[%s3727_s20 + $0xe4] sm:$0xf0] }
 0x3b7   : > { %v631_v60 = vsel %vm426_vm2, %v3578_v59, 0.0 }
 0x3b8   : > { %632 = vadd.xlane.f32.xlu0 %v631_v60  ;;  %v2694_v60 = vor.u32 %v3365_v58, %v2693_v57  ;;  %v2725_v57 = vld [vmem:[%s3727_s20 + $0x20] sm:$0xf] }
 0x3b9   : > { %v3369_v58 = vld [vmem:[%s3727_s20 + $0x5c] sm:$0xf0] }
 0x3cc   : > { %636 = vrot.lane.b32.xlu0 %v3754_v8, %s3642_s30 }
 0x42b   : > { %v633_v61 = vpop.xlane.xlu0 %632 }
 0x42c   : > { %3579 = vrcp.f32 %v633_v61  ;;  %v2695_v61 = vld [vmem:[%s3727_s20 + $0x40] sm:$0xf0] }
 0x432   : > { %v3580_v62 = vpop.eup %3579 }
 0x433   : > { %v635_v0 = vmul.f32 %v3580_v62, %v3578_v59  ;;  %v3357_v59 = vld [vmem:[%s3727_s20 + $0x4] sm:$0xf]  ;;  %v2701_v62 = vld [vmem:[%s3727_s20 + $0x8] sm:$0xf] }
 0x43e   : > { %v637_v1 = vpop.permute.xlu0 %636 }
 0x43f   : > { %657 = vmatpush.msra.mxu1 %v637_v1 }
 0x440   : > { %2685 = vmatmul.msk.f32.vlgmr.msra.gmra.mxu1 %vm426_vm2, %v635_v0  ;;  %v2698_v0 = vor.u32 %v3357_v59, %v2695_v61  ;;  %v2798_v59 = vor.u32 %v3386_v52, %v2797_v50  ;;  %v3361_v61 = vld [vmem:[%s3727_s20 + $0x24] sm:$0xf]  ;;  %v3392_v50 = vld [vmem:[%s3732_s7 + $0x18] sm:$0xff] }
 0x441   : > { %2687 = vmatpush.xpose.msk.msrb.mxu1 %vm426_vm2, %v686_v63  ;;  %v3366_v63 = vld [vmem:[%s3727_s20 + $0x44] sm:$0xf0]  ;;  %v3416_v52 = vld [vmem:[%s3732_s7 + $0xd8] sm:$0xff] }
 0x442   : > { %v2702_v1 = vor.u32 %v3366_v63, %v2701_v62  ;;  %1038 = vmatpush.bf16.msrb.mxu3 %v2698_v0  ;;  %v2727_v62 = vld [vmem:[%s3727_s20 + $0x60] sm:$0xf0]  ;;  %v2733_v63 = vld [vmem:[%s3727_s20 + $0x28] sm:$0xf] }
 0x443   : > { %v3370_v0 = vld [vmem:[%s3727_s20 + $0x64] sm:$0xf0] }
 0x444   : > { %1051 = vmatpush.bf16.msra.mxu2 %v2702_v1  ;;  %v3362_v1 = vld [vmem:[%s3727_s20 + $0x2c] sm:$0xf] }
 0x445   : > { %1024 = vmatpush.bf16.msra.mxu1 %v2758_v48  ;;  %v3377_v48 = vld [vmem:[%s3727_s20 + $0xa4] sm:$0xf] }
 0x448   : > { %2688 = vmatmul.msk.f32.vlgmr.msrb.gmra.mxu1 %vm426_vm2, %v684_v2  ;;  %v3358_v2 = vld [vmem:[%s3727_s20 + $0xc] sm:$0xf] }
 0x449   : > { %1025 = vmatpush.bf16.msra.mxu1 %v2694_v60  ;;  %v2706_v6 = vor.u32 %v3358_v2, %v2703_v4  ;;  %v2735_v2 = vld [vmem:[%s3727_s20 + $0x68] sm:$0xf0]  ;;  %v2726_v4 = vor.u32 %v3369_v58, %v2725_v57  ;;  %v3399_v57 = vld [vmem:[%s3732_s7 + $0x50] sm:$0xff] }
 0x44a   : > { %v3407_v58 = vld [vmem:[%s3732_s7 + $0x90] sm:$0xff] }
 0x4bd   : > { %v659_v7 = vpop.f32.mrf.mxu1 }
 0x4be   : > { %v662_v8 = vpack.c.bf16 %v659_v7, %v659_v7 }
 0x4c0   : > { %2686 = vmatmul.msk.bf16.vlgmr.msrb.gmra.mxu2 %vm426_vm2, %v662_v8  ;;  %v2773_v8 = vld [vmem:[%s3727_s20 + $0x90] sm:$0xf] }
 0x4c5   : > { %v708_v9 = vpop.f32.mrf.mxu1 }
 0x4c6   : > { %v711_v10 = vmul.f32 0.35355338, %v708_v9  ;;  %v3383_v9 = vld [vmem:[%s3727_s20 + $0xcc] sm:$0xf0] }
 0x4c8   : > { %v712_v11 = vsel %vm426_vm2, %v711_v10, -inf }
 0x4c9   : > { %713 = vmax.xlane.f32.xlu0 %v712_v11 }
 0x53c   : > { %v714_v12 = vpop.xlane.xlu0 %713 }
 0x53d   : > { %v715_v13 = vsub.f32 %v711_v10, %v714_v12  ;;  %v3375_v10 = vld [vmem:[%s3727_s20 + $0x94] sm:$0xf]  ;;  %v2774_v12 = vor.u32 %v3383_v9, %v2773_v8  ;;  %v2738_v8 = vor.u32 %v3362_v1, %v2735_v2  ;;  %v2805_v9 = vld [vmem:[%s3727_s20 + $0xb0] sm:$0xf]  ;;  %v3452_v1 = vld [vmem:[%s3732_s7 + $0x1f8] sm:$0xff] }
 0x53e   : > { %v3397_v2 = vld [vmem:[%s3732_s7 + $0x40] sm:$0xff] }
 0x53f   : > { %v716_v14 = vmul.f32 1.442695, %v715_v13  ;;  %v2775_v13 = vld [vmem:[%s3727_s20 + $0xd0] sm:$0xf0]  ;;  %1076 = vmatpush.bf16.msrb.mxu1 %v2774_v12 }
 0x540   : > { %v2807_v12 = vld [vmem:[%s3727_s20 + $0xf0] sm:$0xf0] }
 0x541   : > { %3581 = vpow2.f32 %v716_v14  ;;  %v2781_v14 = vld [vmem:[%s3727_s20 + $0x98] sm:$0xf] }
 0x543   : > { %v678_v15 = vpop.f32.mrf.mxu2 }
 0x544   : > { %v682_v16 = vadd.f32 %v678_v15, %v593_v55  ;;  %v2767_v55 = vld [vmem:[%s3727_s20 + $0xc8] sm:$0xf0]  ;;  %v3384_v15 = vld [vmem:[%s3727_s20 + $0xd4] sm:$0xf0] }
 0x545   : > { %v2770_v56 = vor.u32 %v3374_v54, %v2767_v55  ;;  %v2799_v54 = vld [vmem:[%s3727_s20 + $0xe8] sm:$0xf0]  ;;  %v2790_v55 = vor.u32 %v3385_v47, %v2789_v46  ;;  %v3393_v46 = vld [vmem:[%s3732_s7 + $0x20] sm:$0xff] }
 0x546   : > { %v2802_v60 = vor.u32 %v3378_v53, %v2799_v54  ;;  %v3417_v47 = vld [vmem:[%s3732_s7 + $0xe0] sm:$0xff]  ;;  %v3400_v53 = vld [vmem:[%s3732_s7 + $0x58] sm:$0xff] }
 0x547   : > { %v3582_v17 = vpop.eup %3581  ;;  %1063 = vmatpush.bf16.msra.mxu0 %v2770_v56  ;;  %v2794_v56 = vor.u32 %v3377_v48, %v2791_v49  ;;  %v3401_v48 = vld [vmem:[%s3732_s7 + $0x60] sm:$0xff]  ;;  %v3408_v54 = vld [vmem:[%s3732_s7 + $0x98] sm:$0xff] }
 0x548   : > { %v718_v18 = vsel %vm426_vm2, %v3582_v17, 0.0  ;;  %v3409_v49 = vld [vmem:[%s3732_s7 + $0xa0] sm:$0xff] }
 0x549   : > { %719 = vadd.xlane.f32.xlu1 %v718_v18  ;;  %v3376_v18 = vld [vmem:[%s3727_s20 + $0x9c] sm:$0xf] }
 0x54b   : > { %v680_v19 = vpop.f32.mrf.mxu2  ;;  %1064 = vmatpush.bf16.msra.mxu0 %v2706_v6  ;;  %v2730_v6 = vor.u32 %v3361_v61, %v2727_v62  ;;  %v3406_v61 = vld [vmem:[%s3732_s7 + $0x88] sm:$0xff]  ;;  %v3389_v62 = vld [vmem:[%s3732_s7] sm:$0xff] }
 0x54c   : > { %v2783_v19 = vld [vmem:[%s3727_s20 + $0xd8] sm:$0xf0] }
 0x5bc   : > { %v720_v20 = vpop.xlane.xlu1 %719 }
 0x5bd   : > { %3583 = vrcp.f32 %v720_v20  ;;  %v2709_v20 = vld [vmem:[%s3727_s20 + $0x10] sm:$0xf] }
 0x5be   : > { %3585 = vrcp.f32 %v3643_v34 }
 0x5c3   : > { %v3584_v21 = vpop.eup %3583 }
 0x5c4   : > { %v722_v22 = vmul.f32 %v3584_v21, %v3582_v17  ;;  %v3586_v35 = vpop.eup %3585  ;;  %v2782_v17 = vor.u32 %v3384_v15, %v2781_v14  ;;  %v3388_v14 = vld [vmem:[%s3727_s20 + $0xf4] sm:$0xf0]  ;;  %v3380_v15 = vld [vmem:[%s3727_s20 + $0xbc] sm:$0xf] }
 0x5c5   : > { %v777_v36 = vmul.f32 32.0, %v3586_v35  ;;  %vm781_vm4 = vweird.f32 %v3586_v35 }
 0x5c6   : > { %2689 = vmatmul.msk.f32.vlgmr.msra.gmra.mxu3 %vm426_vm2, %v722_v22  ;;  %v2786_v22 = vor.u32 %v3376_v18, %v2783_v19  ;;  %1102 = vmatpush.bf16.msrb.mxu2 %v2782_v17  ;;  %v2741_v19 = vld [vmem:[%s3727_s20 + $0x30] sm:$0xf] }
 0x5c7   : > { %v778_v37 = vsub.f32 1.0, %v777_v36 }
 0x5c9   : > { %v779_v38 = vmul.f32 %v3586_v35, %v778_v37 }
 0x5cb   : > { %v780_v39 = vadd.f32 %v3586_v35, %v779_v38 }
 0x5cd   : > { %v3803_v40 = vsel %vm781_vm4, %v3586_v35, %v780_v39 }
 0x649   : > { %v746_v25 = vpop.f32.mrf.mxu3 }
 0x64a   : > { %v749_v26 = vpack.c.bf16 %v746_v25, %v746_v25  ;;  %v2710_v25 = vor.u32 %v3367_v23, %v2709_v20  ;;  %v3371_v20 = vld [vmem:[%s3727_s20 + $0x6c] sm:$0xf0]  ;;  %v3363_v23 = vld [vmem:[%s3727_s20 + $0x34] sm:$0xf] }
 0x64c   : > { %2690 = vmatmul.msk.bf16.vlgmr.msrb.gmra.mxu0 %vm426_vm2, %v749_v26  ;;  %v2711_v26 = vld [vmem:[%s3727_s20 + $0x50] sm:$0xf0]  ;;  %1077 = vmatpush.bf16.msrb.mxu1 %v2710_v25  ;;  %v2749_v25 = vld [vmem:[%s3727_s20 + $0x38] sm:$0xf] }
 0x64d   : > { %1115 = vmatpush.bf16.msrb.mxu0 %v2786_v22 }
 0x6c9   : > { %v765_v28 = vpop.f32.mrf.mxu0 }
 0x6ca   : > { %v769_v29 = vadd.f32 %v765_v28, %v682_v16  ;;  %v2778_v16 = vor.u32 %v3375_v10, %v2775_v13  ;;  %v3368_v28 = vld [vmem:[%s3727_s20 + $0x54] sm:$0xf0]  ;;  %v3387_v10 = vld [vmem:[%s3727_s20 + $0xec] sm:$0xf0] }
 0x6cb   : > { %v2813_v13 = vld [vmem:[%s3727_s20 + $0xb8] sm:$0xf]  ;;  %v2806_v17 = vor.u32 %v3387_v10, %v2805_v9  ;;  %v3451_v9 = vld [vmem:[%s3732_s7 + $0x1f0] sm:$0xff] }
 0x6cc   : > { %v771_v30 = vadd.f32 %v770_v27, %v769_v29  ;;  %1089 = vmatpush.bf16.msra.mxu3 %v2778_v16  ;;  %v2717_v27 = vld [vmem:[%s3727_s20 + $0x18] sm:$0xf]  ;;  %v2714_v29 = vor.u32 %v3359_v24, %v2711_v26  ;;  %v2815_v16 = vld [vmem:[%s3727_s20 + $0xf8] sm:$0xf0]  ;;  %v2743_v24 = vld [vmem:[%s3727_s20 + $0x70] sm:$0xf0] }
 0x6cd   : > { %v2818_v22 = vor.u32 %v3380_v15, %v2815_v16  ;;  %v3372_v26 = vld [vmem:[%s3727_s20 + $0x74] sm:$0xf0]  ;;  %v3435_v10 = vld [vmem:[%s3732_s7 + $0x170] sm:$0xff]  ;;  %v3442_v15 = vld [vmem:[%s3732_s7 + $0x1a8] sm:$0xff] }
 0x6ce   : > { %v772_v31 = vadd.f32 %v771_v30, %v3745_v3  ;;  %v2718_v30 = vor.u32 %v3368_v28, %v2717_v27  ;;  %v3364_v27 = vld [vmem:[%s3727_s20 + $0x3c] sm:$0xf]  ;;  %v3425_v16 = vld [vmem:[%s3732_s7 + $0x120] sm:$0xff] }
 0x6cf   : > { %v2751_v28 = vld [vmem:[%s3727_s20 + $0x78] sm:$0xf0] }
 0x6d0   : > { %v773_v32 = vsel %vm402_vm1, %v772_v31, 0.0  ;;  %1090 = vmatpush.bf16.msra.mxu3 %v2714_v29  ;;  %1103 = vmatpush.bf16.msrb.mxu2 %v2718_v30  ;;  %v2742_v29 = vor.u32 %v3371_v20, %v2741_v19  ;;  %v2746_v30 = vor.u32 %v3363_v23, %v2743_v24  ;;  %v3441_v19 = vld [vmem:[%s3732_s7 + $0x1a0] sm:$0xff]  ;;  %v3424_v20 = vld [vmem:[%s3732_s7 + $0x118] sm:$0xff]  ;;  %v3447_v23 = vld [vmem:[%s3732_s7 + $0x1d0] sm:$0xff] }
 0x6d1   : > { %774 = vadd.xlane.f32.xlu2 %v773_v32  ;;  %v767_v33 = vpop.f32.mrf.mxu0  ;;  %v2719_v32 = vld [vmem:[%s3727_s20 + $0x58] sm:$0xf0] }
 0x6d2   : > { %v3432_v24 = vld [vmem:[%s3732_s7 + $0x158] sm:$0xff] }
 0x744   : > { %v775_v3 = vpop.xlane.xlu2 %774 }
 0x745   : > { %v783_v41 = vmul.f32 %v3803_v40, %v775_v3  ;;  %v802_v3 = vperm.slane %v3751_v5, 4 }
 0x747   : > { %v3806_v42 = vsub.f32 %v772_v31, %v783_v41  ;;  %v3360_v31 = vld [vmem:[%s3727_s20 + $0x1c] sm:$0xf] }
 0x748   : > { %v2722_v33 = vor.u32 %v3360_v31, %v2719_v32  ;;  %v2750_v31 = vor.u32 %v3372_v26, %v2749_v25  ;;  %v2754_v32 = vor.u32 %v3364_v27, %v2751_v28  ;;  %v3440_v25 = vld [vmem:[%s3732_s7 + $0x198] sm:$0xff]  ;;  %v3422_v26 = vld [vmem:[%s3732_s7 + $0x108] sm:$0xff]  ;;  %v3431_v28 = vld [vmem:[%s3732_s7 + $0x150] sm:$0xff] }
 0x749   : > { %v785_v43 = vmul.f32 %v3806_v42, %v3806_v42  ;;  %v3446_v27 = vld [vmem:[%s3732_s7 + $0x1c8] sm:$0xff] }
 0x74a   : > { %1116 = vmatpush.bf16.msrb.mxu0 %v2722_v33  ;;  %v3396_v33 = vld [vmem:[%s3732_s7 + $0x38] sm:$0xff] }
 0x74b   : > { %v786_v44 = vsel %vm402_vm1, %v785_v43, 0.0  ;;  %v804_v43 = vperm.slane %v3751_v5, 5 }
 0x74c   : > { %787 = vadd.xlane.f32.xlu0 %v786_v44 }
 0x7bf   : > { %v788_v7 = vpop.xlane.xlu0 %787 }
 0x7c0   : > { %v789_v11 = vmul.f32 %v788_v7, %v3803_v40  ;;  %v2734_v7 = vor.u32 %v3370_v0, %v2733_v63  ;;  %v3413_v63 = vld [vmem:[%s3732_s7 + $0xc0] sm:$0xff]  ;;  %v3428_v0 = vld [vmem:[%s3732_s7 + $0x138] sm:$0xff] }
 0x7c2   : > { %v790_v21 = vadd.f32 1e-05, %v789_v11  ;;  %v3379_v11 = vld [vmem:[%s3727_s20 + $0xb4] sm:$0xf] }
 0x7c3   : > { %v2810_v18 = vor.u32 %v3379_v11, %v2807_v12  ;;  %v3443_v11 = vld [vmem:[%s3732_s7 + $0x1b0] sm:$0xff]  ;;  %v3426_v12 = vld [vmem:[%s3732_s7 + $0x128] sm:$0xff] }
 0x7c4   : > { %3587 = vrsqrt.f32 %v790_v21  ;;  %vm797_vm6 = vweird.f32 %v790_v21 }
 0x7ca   : > { %v3588_v34 = vpop.eup %3587 }
 0x7cb   : > { %v792_v35 = vmul.f32 %v3588_v34, %v790_v21  ;;  %vm798_vm5 = vweird.f32 %v3588_v34  ;;  %v2814_v21 = vor.u32 %v3388_v14, %v2813_v13  ;;  %v3450_v13 = vld [vmem:[%s3732_s7 + $0x1e8] sm:$0xff] }
 0x7cc   : > { %vm799_vm7 = vmor %vm797_vm6, %vm798_vm5  ;;  %v3434_v14 = vld [vmem:[%s3732_s7 + $0x168] sm:$0xff] }
 0x7cd   : > { %v793_v36 = vmul.f32 %v3588_v34, %v792_v35  ;;  %v3404_v35 = vld [vmem:[%s3732_s7 + $0x78] sm:$0xff] }
 0x7cf   : > { %v794_v37 = vmul.f32 0.5, %v793_v36  ;;  %v3412_v36 = vld [vmem:[%s3732_s7 + $0xb8] sm:$0xff] }
 0x7d1   : > { %v795_v38 = vsub.f32 1.5, %v794_v37  ;;  %v3395_v37 = vld [vmem:[%s3732_s7 + $0x30] sm:$0xff] }
 0x7d3   : > { %v796_v39 = vmul.f32 %v3588_v34, %v795_v38  ;;  %v3419_v38 = vld [vmem:[%s3732_s7 + $0xf0] sm:$0xff] }
 0x7d5   : > { %v800_v41 = vsel %vm799_vm7, %v3588_v34, %v796_v39  ;;  %v3420_v34 = vld [vmem:[%s3732_s7 + $0xf8] sm:$0xff]  ;;  %v3403_v39 = vld [vmem:[%s3732_s7 + $0x70] sm:$0xff] }
 0x7d6   : > { %v801_v44 = vmul.f32 %v800_v41, %v3806_v42  ;;  %v3394_v41 = vld [vmem:[%s3732_s7 + $0x28] sm:$0xff] }
 0x7d8   : > { %v803_v45 = vmul.f32 %v802_v3, %v801_v44  ;;  %v3411_v3 = vld [vmem:[%s3732_s7 + $0xb0] sm:$0xff]  ;;  %v3402_v44 = vld [vmem:[%s3732_s7 + $0x68] sm:$0xff] }
 0x7da   : > { %v3852_v51 = vadd.f32 %v804_v43, %v803_v45  ;;  %v3418_v43 = vld [vmem:[%s3732_s7 + $0xe8] sm:$0xff] }
 0x7db   : > { %v3410_v45 = vld [vmem:[%s3732_s7 + $0xa8] sm:$0xff] }
 0x7dc   : > { %v3859_v42 = vpack.c.bf16 %v3852_v51, %v3852_v51 }
 0x7de   : > { %2819 = vmatmul.msk.bf16.vlgmr.msra.gmra.mxu1 %vm402_vm1, %v3859_v42  ;;  %2820 = vmatmul.msk.bf16.vlgmr.msrb.gmra.mxu3 %vm402_vm1, %v3859_v42 }
 0x7df   : > { %2821 = vmatmul.msk.bf16.vlgmr.msra.gmra.mxu2 %vm402_vm1, %v3859_v42  ;;  %2822 = vmatmul.msk.bf16.vlgmr.msra.gmra.mxu0 %vm402_vm1, %v3859_v42 }
 0x7e0   : > { %1128 = vmatpush.bf16.msra.mxu1 %v2790_v55  ;;  %1141 = vmatpush.bf16.msrb.mxu3 %v2794_v56  ;;  %v3391_v55 = vld [vmem:[%s3732_s7 + $0x10] sm:$0xff] }
 0x7e1   : > { %1154 = vmatpush.bf16.msra.mxu2 %v2798_v59  ;;  %1167 = vmatpush.bf16.msra.mxu0 %v2802_v60  ;;  %v3415_v56 = vld [vmem:[%s3732_s7 + $0xd0] sm:$0xff]  ;;  %v3390_v59 = vld [vmem:[%s3732_s7 + $0x8] sm:$0xff] }
 0x7e2   : > { %v3398_v60 = vld [vmem:[%s3732_s7 + $0x48] sm:$0xff] }
 0x7e4   : > { %1129 = vmatpush.bf16.msra.mxu1 %v2726_v4  ;;  %1142 = vmatpush.bf16.msrb.mxu3 %v2730_v6  ;;  %v3405_v4 = vld [vmem:[%s3732_s7 + $0x80] sm:$0xff]  ;;  %v3436_v6 = vld [vmem:[%s3732_s7 + $0x178] sm:$0xff] }
 0x7e5   : > { %1155 = vmatpush.bf16.msra.mxu2 %v2734_v7  ;;  %1168 = vmatpush.bf16.msra.mxu0 %v2738_v8  ;;  %v3444_v7 = vld [vmem:[%s3732_s7 + $0x1b8] sm:$0xff]  ;;  %v3427_v8 = vld [vmem:[%s3732_s7 + $0x130] sm:$0xff] }
 0x7ee   : > { %2823 = vmatmul.msk.bf16.vlgmr.msrb.gmra.mxu1 %vm402_vm1, %v3859_v42  ;;  %2824 = vmatmul.msk.bf16.vlgmr.msra.gmra.mxu3 %vm402_vm1, %v3859_v42 }
 0x7ef   : > { %2825 = vmatmul.msk.bf16.vlgmr.msrb.gmra.mxu2 %vm402_vm1, %v3859_v42  ;;  %2826 = vmatmul.msk.bf16.vlgmr.msrb.gmra.mxu0 %vm402_vm1, %v3859_v42 }
 0x7f0   : > { %1180 = vmatpush.bf16.msrb.mxu1 %v2806_v17  ;;  %1193 = vmatpush.bf16.msra.mxu3 %v2810_v18  ;;  %v3449_v17 = vld [vmem:[%s3732_s7 + $0x1e0] sm:$0xff] }
 0x7f1   : > { %1206 = vmatpush.bf16.msrb.mxu2 %v2814_v21  ;;  %1219 = vmatpush.bf16.msrb.mxu0 %v2818_v22  ;;  %v3433_v18 = vld [vmem:[%s3732_s7 + $0x160] sm:$0xff]  ;;  %v3448_v21 = vld [vmem:[%s3732_s7 + $0x1d8] sm:$0xff]  ;;  %v3423_v22 = vld [vmem:[%s3732_s7 + $0x110] sm:$0xff] }
 0x7f4   : > { %1181 = vmatpush.bf16.msrb.mxu1 %v2742_v29  ;;  %1194 = vmatpush.bf16.msra.mxu3 %v2746_v30  ;;  %v3439_v29 = vld [vmem:[%s3732_s7 + $0x190] sm:$0xff]  ;;  %v3421_v30 = vld [vmem:[%s3732_s7 + $0x100] sm:$0xff] }
 0x7f5   : > { %1207 = vmatpush.bf16.msrb.mxu2 %v2750_v31  ;;  %1220 = vmatpush.bf16.msrb.mxu0 %v2754_v32  ;;  %v3445_v31 = vld [vmem:[%s3732_s7 + $0x1c0] sm:$0xff]  ;;  %v3430_v32 = vld [vmem:[%s3732_s7 + $0x148] sm:$0xff] }
 0x7fe   : > { %2827 = vmatmul.msk.bf16.vlgmr.msra.gmra.mxu1 %vm402_vm1, %v3859_v42  ;;  %2828 = vmatmul.msk.bf16.vlgmr.msrb.gmra.mxu3 %vm402_vm1, %v3859_v42 }
 0x7ff   : > { %2829 = vmatmul.msk.bf16.vlgmr.msra.gmra.mxu2 %vm402_vm1, %v3859_v42  ;;  %2830 = vmatmul.msk.bf16.vlgmr.msra.gmra.mxu0 %vm402_vm1, %v3859_v42 }
 0x800   : > { %2283 = vmatpush.bf16.msra.mxu1 %v3396_v33  ;;  %2322 = vmatpush.bf16.msra.mxu0 %v3420_v34  ;;  %v3438_v33 = vld [vmem:[%s3732_s7 + $0x188] sm:$0xff]  ;;  %v3429_v34 = vld [vmem:[%s3732_s7 + $0x140] sm:$0xff] }
 0x801   : > { %2296 = vmatpush.bf16.msrb.mxu3 %v3404_v35  ;;  %2309 = vmatpush.bf16.msra.mxu2 %v3412_v36  ;;  %v3437_v35 = vld [vmem:[%s3732_s7 + $0x180] sm:$0xff]  ;;  %v372_v36 = vld [vmem:[%s3742_s14 + $0x18] sm:$0xff] }
 0x804   : > { %2284 = vmatpush.bf16.msra.mxu1 %v3395_v37  ;;  %2323 = vmatpush.bf16.msra.mxu0 %v3419_v38  ;;  %v839_v37 = vperm.slane %v3751_v5, 2  ;;  %v842_v38 = vperm.slane %v372_v36, 2 }
 0x805   : > { %2297 = vmatpush.bf16.msrb.mxu3 %v3403_v39  ;;  %2310 = vmatpush.bf16.msra.mxu2 %v3411_v3  ;;  %v370_v3 = vld [vmem:[%s3742_s14 + $0x8] sm:$0xff] }
 0x808   : > { %2285 = vmatpush.bf16.msra.mxu1 %v3394_v41  ;;  %2324 = vmatpush.bf16.msra.mxu0 %v3418_v43 }
 0x809   : > { %2298 = vmatpush.bf16.msrb.mxu3 %v3402_v44  ;;  %2311 = vmatpush.bf16.msra.mxu2 %v3410_v45  ;;  %v371_v44 = vld [vmem:[%s3742_s14 + $0x10] sm:$0xff] }
 0x80c   : > { %2286 = vmatpush.bf16.msra.mxu1 %v3393_v46  ;;  %2325 = vmatpush.bf16.msra.mxu0 %v3417_v47  ;;  %v840_v47 = vperm.slane %v370_v3, 2  ;;  %v3455_v3 = vld [vmem:[%s3732_s7 + $0x210] sm:$0xff] }
 0x80d   : > { %2299 = vmatpush.bf16.msrb.mxu3 %v3401_v48  ;;  %2312 = vmatpush.bf16.msra.mxu2 %v3409_v49  ;;  %v841_v49 = vperm.slane %v371_v44, 2  ;;  %v3479_v44 = vld [vmem:[%s3732_s7 + $0x2d0] sm:$0xff] }
 0x80e   : > { %2831 = vmatmul.msk.bf16.vlgmr.msrb.gmra.mxu1 %vm402_vm1, %v3859_v42  ;;  %2832 = vmatmul.msk.bf16.vlgmr.msra.gmra.mxu3 %vm402_vm1, %v3859_v42 }
 0x80f   : > { %2833 = vmatmul.msk.bf16.vlgmr.msrb.gmra.mxu2 %vm402_vm1, %v3859_v42  ;;  %2834 = vmatmul.msk.bf16.vlgmr.msrb.gmra.mxu0 %vm402_vm1, %v3859_v42  ;;  %v3414_v42 = vld [vmem:[%s3732_s7 + $0xc8] sm:$0xff] }
 0x810   : > { %2287 = vmatpush.bf16.msra.mxu1 %v3392_v50  ;;  %2326 = vmatpush.bf16.msra.mxu0 %v3416_v52  ;;  %v3460_v50 = vld [vmem:[%s3732_s7 + $0x238] sm:$0xff] }
 0x811   : > { %2300 = vmatpush.bf16.msrb.mxu3 %v3400_v53  ;;  %2313 = vmatpush.bf16.msra.mxu2 %v3408_v54  ;;  %v3484_v53 = vld [vmem:[%s3732_s7 + $0x2f8] sm:$0xff] }
 0x814   : > { %2288 = vmatpush.bf16.msra.mxu1 %v3391_v55  ;;  %2327 = vmatpush.bf16.msra.mxu0 %v3415_v56 }
 0x815   : > { %2301 = vmatpush.bf16.msrb.mxu3 %v3399_v57  ;;  %2314 = vmatpush.bf16.msra.mxu2 %v3407_v58 }
 0x818   : > { %2289 = vmatpush.bf16.msra.mxu1 %v3390_v59  ;;  %2328 = vmatpush.bf16.msra.mxu0 %v3414_v42  ;;  %v3459_v59 = vld [vmem:[%s3732_s7 + $0x230] sm:$0xff] }
 0x819   : > { %2302 = vmatpush.bf16.msrb.mxu3 %v3398_v60  ;;  %2315 = vmatpush.bf16.msra.mxu2 %v3406_v61  ;;  %v3483_v61 = vld [vmem:[%s3732_s7 + $0x2f0] sm:$0xff] }
 0x81c   : > { %2290 = vmatpush.bf16.msra.mxu1 %v3389_v62  ;;  %2329 = vmatpush.bf16.msra.mxu0 %v3413_v63  ;;  %v3468_v63 = vld [vmem:[%s3732_s7 + $0x278] sm:$0xff] }
 0x81d   : > { %2303 = vmatpush.bf16.msrb.mxu3 %v3397_v2  ;;  %2316 = vmatpush.bf16.msra.mxu2 %v3405_v4  ;;  %v3476_v2 = vld [vmem:[%s3732_s7 + $0x2b8] sm:$0xff] }
 0x81e   : > { %v376_v4 = vld [vmem:[%s3742_s14 + $0x38] sm:$0xff] }
 0x820   : > { %2335 = vmatpush.bf16.msrb.mxu1 %v3428_v0  ;;  %2374 = vmatpush.bf16.msrb.mxu0 %v3452_v1  ;;  %v373_v0 = vld [vmem:[%s3742_s14 + $0x20] sm:$0xff] }
 0x821   : > { %2348 = vmatpush.bf16.msra.mxu3 %v3436_v6  ;;  %2361 = vmatpush.bf16.msrb.mxu2 %v3444_v7  ;;  %v3458_v7 = vld [vmem:[%s3732_s7 + $0x228] sm:$0xff] }
 0x824   : > { %2336 = vmatpush.bf16.msrb.mxu1 %v3427_v8  ;;  %2375 = vmatpush.bf16.msrb.mxu0 %v3451_v9  ;;  %v3482_v8 = vld [vmem:[%s3732_s7 + $0x2e8] sm:$0xff]  ;;  %v843_v9 = vperm.slane %v373_v0, 2  ;;  %v3477_v0 = vld [vmem:[%s3732_s7 + $0x2c0] sm:$0xff] }
 0x825   : > { %2349 = vmatpush.bf16.msra.mxu3 %v3435_v10  ;;  %2362 = vmatpush.bf16.msrb.mxu2 %v3443_v11  ;;  %v846_v11 = vperm.slane %v376_v4, 2 }
 0x828   : > { %2337 = vmatpush.bf16.msrb.mxu1 %v3426_v12  ;;  %2376 = vmatpush.bf16.msrb.mxu0 %v3450_v13  ;;  %v3467_v12 = vld [vmem:[%s3732_s7 + $0x270] sm:$0xff] }
 0x829   : > { %2350 = vmatpush.bf16.msra.mxu3 %v3434_v14  ;;  %2363 = vmatpush.bf16.msrb.mxu2 %v3442_v15  ;;  %v3475_v14 = vld [vmem:[%s3732_s7 + $0x2b0] sm:$0xff] }
 0x82c   : > { %2338 = vmatpush.bf16.msrb.mxu1 %v3425_v16  ;;  %2377 = vmatpush.bf16.msrb.mxu0 %v3449_v17  ;;  %v3457_v16 = vld [vmem:[%s3732_s7 + $0x220] sm:$0xff]  ;;  %v374_v17 = vld [vmem:[%s3742_s14 + $0x28] sm:$0xff] }
 0x82d   : > { %2351 = vmatpush.bf16.msra.mxu3 %v3433_v18  ;;  %2364 = vmatpush.bf16.msrb.mxu2 %v3441_v19 }
 0x830   : > { %2339 = vmatpush.bf16.msrb.mxu1 %v3424_v20  ;;  %2378 = vmatpush.bf16.msrb.mxu0 %v3448_v21  ;;  %v3481_v20 = vld [vmem:[%s3732_s7 + $0x2e0] sm:$0xff]  ;;  %v375_v21 = vld [vmem:[%s3742_s14 + $0x30] sm:$0xff] }
 0x831   : > { %2352 = vmatpush.bf16.msra.mxu3 %v3432_v24  ;;  %2365 = vmatpush.bf16.msrb.mxu2 %v3440_v25  ;;  %v3474_v25 = vld [vmem:[%s3732_s7 + $0x2a8] sm:$0xff] }
 0x834   : > { %2340 = vmatpush.bf16.msrb.mxu1 %v3423_v22  ;;  %2379 = vmatpush.bf16.msrb.mxu0 %v3447_v23  ;;  %v3466_v23 = vld [vmem:[%s3732_s7 + $0x268] sm:$0xff] }
 0x835   : > { %2353 = vmatpush.bf16.msra.mxu3 %v3431_v28  ;;  %2366 = vmatpush.bf16.msrb.mxu2 %v3439_v29  ;;  %v845_v28 = vperm.slane %v375_v21, 2  ;;  %v3456_v29 = vld [vmem:[%s3732_s7 + $0x218] sm:$0xff]  ;;  %v3469_v21 = vld [vmem:[%s3732_s7 + $0x280] sm:$0xff] }
 0x838   : > { %2341 = vmatpush.bf16.msrb.mxu1 %v3422_v26  ;;  %2380 = vmatpush.bf16.msrb.mxu0 %v3446_v27  ;;  %v844_v26 = vperm.slane %v374_v17, 2  ;;  %v3515_v17 = vld [vmem:[%s3732_s7 + $0x3f0] sm:$0xff] }
 0x839   : > { %2354 = vmatpush.bf16.msra.mxu3 %v3430_v32  ;;  %2367 = vmatpush.bf16.msrb.mxu2 %v3438_v33 }
 0x83c   : > { %2342 = vmatpush.bf16.msrb.mxu1 %v3421_v30  ;;  %2381 = vmatpush.bf16.msrb.mxu0 %v3445_v31  ;;  %v3480_v31 = vld [vmem:[%s3732_s7 + $0x2d8] sm:$0xff] }
 0x83d   : > { %2355 = vmatpush.bf16.msra.mxu3 %v3429_v34  ;;  %2368 = vmatpush.bf16.msrb.mxu2 %v3437_v35  ;;  %v3465_v34 = vld [vmem:[%s3732_s7 + $0x260] sm:$0xff] }
 0x85b   : > { %v1027_v39 = vpop.f32.mrf.mxu1 }
 0x85c   : > { %v1028_v41 = vadd.f32 %v1027_v39, %v839_v37  ;;  %v1066_v43 = vpop.f32.mrf.mxu0  ;;  %v3473_v37 = vld [vmem:[%s3732_s7 + $0x2a0] sm:$0xff] }
 0x85d   : > { %v1067_v45 = vadd.f32 %v1066_v43, %v842_v38 }
 0x85e   : > { %v1226_v46 = vmax.f32 %v1028_v41, 0.0 }
 0x85f   : > { %v1229_v48 = vmax.f32 %v1067_v45, 0.0 }
 0x860   : > { %v1242_v52 = vpack.c.bf16 %v1226_v46, %v1226_v46  ;;  %v3464_v46 = vld [vmem:[%s3732_s7 + $0x258] sm:$0xff] }
 0x861   : > { %v1245_v54 = vpack.c.bf16 %v1229_v48, %v1229_v48  ;;  %v1040_v5 = vpop.f32.mrf.mxu3 }
 0x862   : > { %v1041_v55 = vadd.f32 %v1040_v5, %v840_v47  ;;  %v1053_v56 = vpop.f32.mrf.mxu2  ;;  %2291 = vmatmul.bf16.vlgmr.msra.gmra.mxu1 %v1242_v52  ;;  %v377_v47 = vld [vmem:[%s3742_s14 + $0x40] sm:$0xff] }
 0x863   : > { %v1054_v57 = vadd.f32 %v1053_v56, %v841_v49  ;;  %2330 = vmatmul.bf16.vlgmr.msra.gmra.mxu0 %v1245_v54  ;;  %2387 = vmatpush.bf16.msra.mxu1 %v3460_v50  ;;  %v1029_v58 = vpop.f32.mrf.mxu1  ;;  %v3472_v49 = vld [vmem:[%s3732_s7 + $0x298] sm:$0xff]  ;;  %v3478_v54 = vld [vmem:[%s3732_s7 + $0x2c8] sm:$0xff]  ;;  %v847_v5 = vperm.slane %v377_v47, 2  ;;  %v3497_v47 = vld [vmem:[%s3732_s7 + $0x360] sm:$0xff] }
 0x864   : > { %v1227_v42 = vmax.f32 %v1041_v55, 0.0  ;;  %2426 = vmatpush.bf16.msra.mxu0 %v3484_v53  ;;  %v1068_v60 = vpop.f32.mrf.mxu0  ;;  %v380_v50 = vld [vmem:[%s3742_s14 + $0x58] sm:$0xff]  ;;  %v3454_v53 = vld [vmem:[%s3732_s7 + $0x208] sm:$0xff] }
 0x865   : > { %v1228_v62 = vmax.f32 %v1054_v57, 0.0  ;;  %v850_v56 = vperm.slane %v380_v50, 2  ;;  %v3463_v57 = vld [vmem:[%s3732_s7 + $0x250] sm:$0xff]  ;;  %v3453_v60 = vld [vmem:[%s3732_s7 + $0x200] sm:$0xff] }
 0x866   : > { %v1243_v1 = vpack.c.bf16 %v1227_v42, %v1227_v42  ;;  %v3487_v50 = vld [vmem:[%s3732_s7 + $0x310] sm:$0xff] }
 0x867   : > { %v1244_v6 = vpack.c.bf16 %v1228_v62, %v1228_v62  ;;  %2388 = vmatpush.bf16.msra.mxu1 %v3459_v59  ;;  %v3471_v59 = vld [vmem:[%s3732_s7 + $0x290] sm:$0xff] }
 0x868   : > { %2427 = vmatpush.bf16.msra.mxu0 %v3483_v61  ;;  %2304 = vmatmul.bf16.vlgmr.msrb.gmra.mxu3 %v1243_v1  ;;  %v378_v61 = vld [vmem:[%s3742_s14 + $0x48] sm:$0xff]  ;;  %v3492_v1 = vld [vmem:[%s3732_s7 + $0x338] sm:$0xff] }
 0x869   : > { %2317 = vmatmul.bf16.vlgmr.msra.gmra.mxu2 %v1244_v6  ;;  %2400 = vmatpush.bf16.msrb.mxu3 %v3468_v63  ;;  %v1042_v10 = vpop.f32.mrf.mxu3  ;;  %v3516_v6 = vld [vmem:[%s3732_s7 + $0x3f8] sm:$0xff] }
 0x86a   : > { %2413 = vmatpush.bf16.msra.mxu2 %v3476_v2  ;;  %v1055_v13 = vpop.f32.mrf.mxu2  ;;  %v379_v2 = vld [vmem:[%s3742_s14 + $0x50] sm:$0xff]  ;;  %v848_v10 = vperm.slane %v378_v61, 2 }
 0x86b   : > { %2389 = vmatpush.bf16.msra.mxu1 %v3458_v7  ;;  %v1079_v15 = vpop.f32.mrf.mxu1  ;;  %v3462_v7 = vld [vmem:[%s3732_s7 + $0x248] sm:$0xff] }
 0x86c   : > { %2428 = vmatpush.bf16.msra.mxu0 %v3482_v8  ;;  %v1080_v18 = vadd.f32 %v1079_v15, %v843_v9  ;;  %v1118_v19 = vpop.f32.mrf.mxu0  ;;  %v3470_v9 = vld [vmem:[%s3732_s7 + $0x288] sm:$0xff] }
 0x86d   : > { %v1119_v22 = vadd.f32 %v1118_v19, %v846_v11  ;;  %2401 = vmatpush.bf16.msrb.mxu3 %v3467_v12  ;;  %v849_v12 = vperm.slane %v379_v2, 2 }
 0x86e   : > { %v1230_v24 = vmax.f32 %v1080_v18, 0.0  ;;  %2414 = vmatpush.bf16.msra.mxu2 %v3475_v14  ;;  %v3491_v14 = vld [vmem:[%s3732_s7 + $0x330] sm:$0xff]  ;;  %v3461_v18 = vld [vmem:[%s3732_s7 + $0x240] sm:$0xff] }
 0x86f   : > { %v1233_v27 = vmax.f32 %v1119_v22, 0.0  ;;  %2390 = vmatpush.bf16.msra.mxu1 %v3457_v16  ;;  %v3500_v22 = vld [vmem:[%s3732_s7 + $0x378] sm:$0xff] }
 0x870   : > { %v1246_v30 = vpack.c.bf16 %v1230_v24, %v1230_v24  ;;  %2429 = vmatpush.bf16.msra.mxu0 %v3481_v20 }
 0x871   : > { %v1249_v32 = vpack.c.bf16 %v1233_v27, %v1233_v27  ;;  %2402 = vmatpush.bf16.msrb.mxu3 %v3466_v23  ;;  %v1092_v33 = vpop.f32.mrf.mxu3 }
 0x872   : > { %2415 = vmatpush.bf16.msra.mxu2 %v3474_v25  ;;  %v1093_v35 = vadd.f32 %v1092_v33, %v844_v26  ;;  %v1105_v36 = vpop.f32.mrf.mxu2  ;;  %2343 = vmatmul.bf16.vlgmr.msrb.gmra.mxu1 %v1246_v30  ;;  %v3508_v25 = vld [vmem:[%s3732_s7 + $0x3b8] sm:$0xff]  ;;  %v3514_v30 = vld [vmem:[%s3732_s7 + $0x3e8] sm:$0xff] }
 0x873   : > { %v1106_v38 = vadd.f32 %v1105_v36, %v845_v28  ;;  %2382 = vmatmul.bf16.vlgmr.msrb.gmra.mxu0 %v1249_v32  ;;  %2391 = vmatpush.bf16.msra.mxu1 %v3456_v29  ;;  %v1081_v39 = vpop.f32.mrf.mxu1  ;;  %v3490_v28 = vld [vmem:[%s3732_s7 + $0x328] sm:$0xff]  ;;  %v3499_v32 = vld [vmem:[%s3732_s7 + $0x370] sm:$0xff] }
 0x874   : > { %v1231_v41 = vmax.f32 %v1093_v35, 0.0  ;;  %2430 = vmatpush.bf16.msra.mxu0 %v3480_v31  ;;  %v1120_v43 = vpop.f32.mrf.mxu0  ;;  %v3489_v35 = vld [vmem:[%s3732_s7 + $0x320] sm:$0xff]  ;;  %v3498_v39 = vld [vmem:[%s3732_s7 + $0x368] sm:$0xff] }
 0x875   : > { %v1232_v45 = vmax.f32 %v1106_v38, 0.0  ;;  %2403 = vmatpush.bf16.msrb.mxu3 %v3465_v34  ;;  %v3507_v34 = vld [vmem:[%s3732_s7 + $0x3b0] sm:$0xff] }
 0x876   : > { %v1247_v48 = vpack.c.bf16 %v1231_v41, %v1231_v41  ;;  %2416 = vmatpush.bf16.msra.mxu2 %v3473_v37  ;;  %v3513_v37 = vld [vmem:[%s3732_s7 + $0x3e0] sm:$0xff]  ;;  %v3506_v41 = vld [vmem:[%s3732_s7 + $0x3a8] sm:$0xff] }
 0x877   : > { %v1248_v52 = vpack.c.bf16 %v1232_v45, %v1232_v45  ;;  %2392 = vmatpush.bf16.msra.mxu1 %v3455_v3  ;;  %v3512_v45 = vld [vmem:[%s3732_s7 + $0x3d8] sm:$0xff] }
 0x878   : > { %2431 = vmatpush.bf16.msra.mxu0 %v3479_v44  ;;  %2356 = vmatmul.bf16.vlgmr.msra.gmra.mxu3 %v1247_v48  ;;  %v3488_v44 = vld [vmem:[%s3732_s7 + $0x318] sm:$0xff] }
 0x879   : > { %2369 = vmatmul.bf16.vlgmr.msrb.gmra.mxu2 %v1248_v52  ;;  %2404 = vmatpush.bf16.msrb.mxu3 %v3464_v46  ;;  %v1094_v55 = vpop.f32.mrf.mxu3  ;;  %v381_v46 = vld [vmem:[%s3742_s14 + $0x60] sm:$0xff]  ;;  %v384_v48 = vld [vmem:[%s3742_s14 + $0x78] sm:$0xff] }
 0x87a   : > { %2417 = vmatpush.bf16.msra.mxu2 %v3472_v49  ;;  %v1107_v58 = vpop.f32.mrf.mxu2  ;;  %v3505_v49 = vld [vmem:[%s3732_s7 + $0x3a0] sm:$0xff]  ;;  %v851_v52 = vperm.slane %v381_v46, 2 }
 0x87b   : > { %2393 = vmatpush.bf16.msra.mxu1 %v3454_v53  ;;  %v1131_v42 = vpop.f32.mrf.mxu1  ;;  %v3504_v58 = vld [vmem:[%s3732_s7 + $0x398] sm:$0xff] }
 0x87c   : > { %2432 = vmatpush.bf16.msra.mxu0 %v3478_v54  ;;  %v1132_v62 = vadd.f32 %v1131_v42, %v847_v5  ;;  %v1170_v63 = vpop.f32.mrf.mxu0  ;;  %v3511_v54 = vld [vmem:[%s3732_s7 + $0x3d0] sm:$0xff]  ;;  %v854_v5 = vperm.slane %v384_v48, 2 }
 0x87d   : > { %v1171_v4 = vadd.f32 %v1170_v63, %v850_v56  ;;  %2405 = vmatpush.bf16.msrb.mxu3 %v3463_v57  ;;  %v3496_v56 = vld [vmem:[%s3732_s7 + $0x358] sm:$0xff]  ;;  %v3510_v63 = vld [vmem:[%s3732_s7 + $0x3c8] sm:$0xff] }
 0x87e   : > { %v1234_v8 = vmax.f32 %v1132_v62, 0.0  ;;  %2418 = vmatpush.bf16.msra.mxu2 %v3471_v59  ;;  %v382_v59 = vld [vmem:[%s3742_s14 + $0x68] sm:$0xff]  ;;  %v383_v62 = vld [vmem:[%s3742_s14 + $0x70] sm:$0xff] }
 0x87f   : > { %v1237_v11 = vmax.f32 %v1171_v4, 0.0  ;;  %2394 = vmatpush.bf16.msra.mxu1 %v3453_v60  ;;  %v3486_v60 = vld [vmem:[%s3732_s7 + $0x308] sm:$0xff]  ;;  %v852_v2 = vperm.slane %v382_v59, 2  ;;  %v3503_v4 = vld [vmem:[%s3732_s7 + $0x390] sm:$0xff] }
 0x880   : > { %v1250_v13 = vpack.c.bf16 %v1234_v8, %v1234_v8  ;;  %2433 = vmatpush.bf16.msra.mxu0 %v3477_v0 }
 0x881   : > { %v1253_v15 = vpack.c.bf16 %v1237_v11, %v1237_v11  ;;  %2406 = vmatpush.bf16.msrb.mxu3 %v3462_v7  ;;  %v1144_v16 = vpop.f32.mrf.mxu3  ;;  %v3485_v7 = vld [vmem:[%s3732_s7 + $0x300] sm:$0xff] }
 0x882   : > { %2419 = vmatpush.bf16.msra.mxu2 %v3470_v9  ;;  %v1145_v19 = vadd.f32 %v1144_v16, %v848_v10  ;;  %v1157_v20 = vpop.f32.mrf.mxu2  ;;  %2395 = vmatmul.bf16.vlgmr.msra.gmra.mxu1 %v1250_v13  ;;  %v3509_v10 = vld [vmem:[%s3732_s7 + $0x3c0] sm:$0xff]  ;;  %v3494_v13 = vld [vmem:[%s3732_s7 + $0x348] sm:$0xff] }
 0x883   : > { %2439 = vmatpush.bf16.msrb.mxu1 %v3492_v1  ;;  %v1158_v23 = vadd.f32 %v1157_v20, %v849_v12  ;;  %2434 = vmatmul.bf16.vlgmr.msra.gmra.mxu0 %v1253_v15  ;;  %v1133_v24 = vpop.f32.mrf.mxu1  ;;  %v3495_v1 = vld [vmem:[%s3732_s7 + $0x350] sm:$0xff]  ;;  %v3502_v15 = vld [vmem:[%s3732_s7 + $0x388] sm:$0xff] }
 0x884   : > { %2478 = vmatpush.bf16.msrb.mxu0 %v3516_v6  ;;  %v1235_v26 = vmax.f32 %v1145_v19, 0.0  ;;  %v1172_v27 = vpop.f32.mrf.mxu0  ;;  %v853_v6 = vperm.slane %v383_v62, 2  ;;  %v3493_v19 = vld [vmem:[%s3732_s7 + $0x340] sm:$0xff] }
 0x885   : > { %v1236_v29 = vmax.f32 %v1158_v23, 0.0  ;;  %2407 = vmatpush.bf16.msrb.mxu3 %v3461_v18 }
 0x886   : > { %v1251_v31 = vpack.c.bf16 %v1235_v26, %v1235_v26  ;;  %2420 = vmatpush.bf16.msra.mxu2 %v3469_v21  ;;  %v3501_v21 = vld [vmem:[%s3732_s7 + $0x380] sm:$0xff] }
 0x887   : > { %2440 = vmatpush.bf16.msrb.mxu1 %v3491_v14  ;;  %v1252_v33 = vpack.c.bf16 %v1236_v29, %v1236_v29 }
 0x888   : > { %2479 = vmatpush.bf16.msrb.mxu0 %v3515_v17  ;;  %2408 = vmatmul.bf16.vlgmr.msrb.gmra.mxu3 %v1251_v31 }
 0x889   : > { %2452 = vmatpush.bf16.msra.mxu3 %v3500_v22  ;;  %2421 = vmatmul.bf16.vlgmr.msra.gmra.mxu2 %v1252_v33  ;;  %v1146_v36 = vpop.f32.mrf.mxu3 }
 0x88a   : > { %2465 = vmatpush.bf16.msrb.mxu2 %v3508_v25  ;;  %v1159_v38 = vpop.f32.mrf.mxu2 }
 0x88b   : > { %2441 = vmatpush.bf16.msrb.mxu1 %v3490_v28  ;;  %v1183_v3 = vpop.f32.mrf.mxu1 }
 0x88c   : > { %2480 = vmatpush.bf16.msrb.mxu0 %v3514_v30  ;;  %v1222_v43 = vpop.f32.mrf.mxu0  ;;  %v1184_v61 = vadd.f32 %v1183_v3, %v851_v52 }
 0x88d   : > { %2453 = vmatpush.bf16.msra.mxu3 %v3499_v32  ;;  %v1223_v0 = vadd.f32 %v1222_v43, %v854_v5 }
 0x88e   : > { %2466 = vmatpush.bf16.msrb.mxu2 %v3507_v34  ;;  %v1238_v8 = vmax.f32 %v1184_v61, 0.0 }
 0x88f   : > { %2442 = vmatpush.bf16.msrb.mxu1 %v3489_v35  ;;  %v1241_v11 = vmax.f32 %v1223_v0, 0.0 }
 0x890   : > { %2481 = vmatpush.bf16.msrb.mxu0 %v3513_v37  ;;  %v1254_v17 = vpack.c.bf16 %v1238_v8, %v1238_v8  ;;  %v4062_v37 = vld [vmem:[%s3742_s14] sm:$0xff] }
 0x891   : > { %2454 = vmatpush.bf16.msra.mxu3 %v3498_v39  ;;  %v1196_v53 = vpop.f32.mrf.mxu3  ;;  %v1257_v18 = vpack.c.bf16 %v1241_v11, %v1241_v11  ;;  %v1514_v38 = vperm.slane %v4062_v37, 3 }
 0x892   : > { %2467 = vmatpush.bf16.msrb.mxu2 %v3506_v41  ;;  %v1209_v55 = vpop.f32.mrf.mxu2  ;;  %v1197_v14 = vadd.f32 %v1196_v53, %v852_v2 }
 0x893   : > { %2443 = vmatpush.bf16.msrb.mxu1 %v3488_v44  ;;  %v1185_v57 = vpop.f32.mrf.mxu1  ;;  %v1210_v16 = vadd.f32 %v1209_v55, %v853_v6 }
 0x894   : > { %2482 = vmatpush.bf16.msrb.mxu0 %v3512_v45  ;;  %v1224_v42 = vpop.f32.mrf.mxu0  ;;  %v1239_v20 = vmax.f32 %v1197_v14, 0.0 }
 0x895   : > { %2455 = vmatpush.bf16.msra.mxu3 %v3497_v47  ;;  %v1240_v22 = vmax.f32 %v1210_v16, 0.0 }
 0x896   : > { %2468 = vmatpush.bf16.msrb.mxu2 %v3505_v49  ;;  %v1255_v23 = vpack.c.bf16 %v1239_v20, %v1239_v20 }
 0x897   : > { %2444 = vmatpush.bf16.msrb.mxu1 %v3487_v50  ;;  %v1256_v24 = vpack.c.bf16 %v1240_v22, %v1240_v22 }
 0x898   : > { %2483 = vmatpush.bf16.msrb.mxu0 %v3511_v54 }
 0x899   : > { %2456 = vmatpush.bf16.msra.mxu3 %v3496_v56  ;;  %v1198_v9 = vpop.f32.mrf.mxu3 }
 0x89a   : > { %2469 = vmatpush.bf16.msrb.mxu2 %v3504_v58  ;;  %v1211_v12 = vpop.f32.mrf.mxu2 }
 0x89b   : > { %2445 = vmatpush.bf16.msrb.mxu1 %v3486_v60 }
 0x89c   : > { %2484 = vmatpush.bf16.msrb.mxu0 %v3510_v63 }
 0x89d   : > { %2457 = vmatpush.bf16.msra.mxu3 %v3495_v1 }
 0x89e   : > { %2470 = vmatpush.bf16.msrb.mxu2 %v3503_v4 }
 0x89f   : > { %2446 = vmatpush.bf16.msrb.mxu1 %v3485_v7 }
 0x8a0   : > { %2485 = vmatpush.bf16.msrb.mxu0 %v3509_v10 }
 0x8a1   : > { %2458 = vmatpush.bf16.msra.mxu3 %v3494_v13 }
 0x8a2   : > { %2471 = vmatpush.bf16.msrb.mxu2 %v3502_v15  ;;  %2447 = vmatmul.bf16.vlgmr.msrb.gmra.mxu1 %v1254_v17 }
 0x8a3   : > { %2486 = vmatmul.bf16.vlgmr.msrb.gmra.mxu0 %v1257_v18 }
 0x8a5   : > { %2459 = vmatpush.bf16.msra.mxu3 %v3493_v19 }
 0x8a6   : > { %2472 = vmatpush.bf16.msrb.mxu2 %v3501_v21 }
 0x8a8   : > { %2460 = vmatmul.bf16.vlgmr.msra.gmra.mxu3 %v1255_v23 }
 0x8a9   : > { %2473 = vmatmul.bf16.vlgmr.msrb.gmra.mxu2 %v1256_v24 }
 0x8df   : > { %v2292_v25 = vpop.f32.mrf.mxu1 }
 0x8e0   : > { %v2331_v26 = vpop.f32.mrf.mxu0  ;;  %v2293_v41 = vadd.f32 %v2292_v25, %v1514_v38 }
 0x8e7   : > { %v2294_v27 = vpop.f32.mrf.mxu1 }
 0x8e8   : > { %v2333_v28 = vpop.f32.mrf.mxu0 }
 0x8e9   : > { %v2514_v28 = vperm.slane %v4062_v37, 6 }
 0x8eb   : > { %v2305_v29 = vpop.f32.mrf.mxu3 }
 0x8ec   : > { %v2318_v30 = vpop.f32.mrf.mxu2  ;;  %v2306_v45 = vadd.f32 %v2305_v29, %v2293_v41 }
 0x8ee   : > { %v2319_v48 = vadd.f32 %v2318_v30, %v2306_v45  ;;  %v2516_v30 = vperm.slane %v4062_v37, 7 }
 0x8ef   : > { %v2344_v31 = vpop.f32.mrf.mxu1 }
 0x8f0   : > { %v2383_v32 = vpop.f32.mrf.mxu0  ;;  %v2332_v52 = vadd.f32 %v2331_v26, %v2319_v48 }
 0x8f2   : > { %v2345_v5 = vadd.f32 %v2344_v31, %v2332_v52 }
 0x8f3   : > { %v2307_v33 = vpop.f32.mrf.mxu3 }
 0x8f4   : > { %v2320_v34 = vpop.f32.mrf.mxu2 }
 0x8f7   : > { %v2346_v35 = vpop.f32.mrf.mxu1 }
 0x8f8   : > { %v2385_v36 = vpop.f32.mrf.mxu0 }
 0x8fb   : > { %v2357_v39 = vpop.f32.mrf.mxu3 }
 0x8fc   : > { %v2370_v3 = vpop.f32.mrf.mxu2  ;;  %v2358_v55 = vadd.f32 %v2357_v39, %v2345_v5 }
 0x8fe   : > { %v2371_v56 = vadd.f32 %v2370_v3, %v2358_v55 }
 0x8ff   : > { %v2396_v43 = vpop.f32.mrf.mxu1 }
 0x900   : > { %v2435_v44 = vpop.f32.mrf.mxu0  ;;  %v2384_v59 = vadd.f32 %v2383_v32, %v2371_v56 }
 0x902   : > { %v2397_v42 = vadd.f32 %v2396_v43, %v2384_v59 }
 0x903   : > { %v2359_v46 = vpop.f32.mrf.mxu3 }
 0x904   : > { %v2372_v47 = vpop.f32.mrf.mxu2 }
 0x907   : > { %v2398_v49 = vpop.f32.mrf.mxu1 }
 0x908   : > { %v2437_v50 = vpop.f32.mrf.mxu0 }
 0x90b   : > { %v2409_v53 = vpop.f32.mrf.mxu3 }
 0x90c   : > { %v2422_v54 = vpop.f32.mrf.mxu2  ;;  %v2410_v61 = vadd.f32 %v2409_v53, %v2397_v42 }
 0x90e   : > { %v2423_v63 = vadd.f32 %v2422_v54, %v2410_v61 }
 0x910   : > { %v2436_v1 = vadd.f32 %v2435_v44, %v2423_v63 }
 0x913   : > { %v2411_v57 = vpop.f32.mrf.mxu3 }
 0x914   : > { %v2424_v58 = vpop.f32.mrf.mxu2 }
 0x91f   : > { %v2448_v60 = vpop.f32.mrf.mxu1 }
 0x920   : > { %v2487_v62 = vpop.f32.mrf.mxu0  ;;  %v2449_v4 = vadd.f32 %v2448_v60, %v2436_v1 }
 0x927   : > { %v2450_v0 = vpop.f32.mrf.mxu1 }
 0x928   : > { %v2489_v2 = vpop.f32.mrf.mxu0 }
 0x92b   : > { %v2461_v6 = vpop.f32.mrf.mxu3 }
 0x92c   : > { %v2462_v7 = vadd.f32 %v2461_v6, %v2449_v4  ;;  %v2474_v8 = vpop.f32.mrf.mxu2 }
 0x92e   : > { %v2475_v9 = vadd.f32 %v2474_v8, %v2462_v7 }
 0x930   : > { %v2488_v10 = vadd.f32 %v2487_v62, %v2475_v9 }
 0x932   : > { %v2491_v11 = vadd.f32 %v2488_v10, %v3852_v51 }
 0x933   : > { %v2463_v12 = vpop.f32.mrf.mxu3 }
 0x934   : > { %v2476_v13 = vpop.f32.mrf.mxu2  ;;  %v2492_v14 = vsel %vm402_vm1, %v2491_v11, 0.0 }
 0x935   : > { %2493 = vadd.xlane.f32.xlu1 %v2492_v14 }
 0x9a8   : > { %v2494_v15 = vpop.xlane.xlu1 %2493 }
 0x9a9   : > { %v2495_v16 = vmul.f32 %v2494_v15, %v3803_v40 }
 0x9ab   : > { %v2496_v17 = vsub.f32 %v2491_v11, %v2495_v16 }
 0x9ad   : > { %v2497_v18 = vmul.f32 %v2496_v17, %v2496_v17 }
 0x9af   : > { %v2498_v19 = vsel %vm402_vm1, %v2497_v18, 0.0 }
 0x9b0   : > { %2499 = vadd.xlane.f32.xlu0 %v2498_v19 }
 0xa23   : > { %v2500_v20 = vpop.xlane.xlu0 %2499 }
 0xa24   : > { %v2501_v21 = vmul.f32 %v2500_v20, %v3803_v40 }
 0xa26   : > { %v2502_v22 = vadd.f32 1e-05, %v2501_v21 }
 0xa28   : > { %3589 = vrsqrt.f32 %v2502_v22  ;;  %vm2509_vm9 = vweird.f32 %v2502_v22 }
 0xa2e   : > { %v3590_v23 = vpop.eup %3589 }
 0xa2f   : > { %v2504_v51 = vmul.f32 %v3590_v23, %v2502_v22  ;;  %vm2510_vm8 = vweird.f32 %v3590_v23 }
 0xa30   : > { %vm2511_vm10 = vmor %vm2509_vm9, %vm2510_vm8 }
 0xa31   : > { %v2505_v24 = vmul.f32 %v3590_v23, %v2504_v51 }
 0xa33   : > { %v2506_v25 = vmul.f32 0.5, %v2505_v24 }
 0xa35   : > { %v2507_v26 = vsub.f32 1.5, %v2506_v25 }
 0xa37   : > { %v2508_v27 = vmul.f32 %v3590_v23, %v2507_v26 }
 0xa39   : > { %v2512_v29 = vsel %vm2511_vm10, %v3590_v23, %v2508_v27 }
 0xa3a   : > { %v2513_v31 = vmul.f32 %v2512_v29, %v2496_v17 }
 0xa3c   : > { %v2515_v32 = vmul.f32 %v2514_v28, %v2513_v31  ;;  %2522 = sbr.rel (%p3347_p8) target bundleno = 2626 (0xa42), region = 52 }
 0xa3e   : > { %v2517_v33 = vadd.f32 %v2516_v30, %v2515_v32 }
 0xa40   : > { %2518 = vst.msk [vmem:[#allocation2] sm:$0xff] %vm402_vm1, %v2517_v33 }
 0xa41   : > { %2523 = vst.msk [vmem:[%s3737_s1] sm:$0xff] %vm402_vm1, %v2517_v33 }
 0xa42 PF: > { %s16_s25 = sadd.s32 1, %s3630_s25   ;;  %s4102_s21 = smov %s3622_s23 }
 0xa43   : > { %p13_p9 = scmp.ge.s32.totalorder %s16_s25, 6   ;;  %s4103_s22 = smov %s3626_s24 }
 0xa44   : > { %s4104_s23 = smov %s4107_s26  ;;  %s4105_s24 = smov %s4111_s27 }
 0xa45   :  { %15 = sbr.rel (!%p13_p9) target bundleno = 4 (0x4), region = 97 }

</bundles_post_ra>
